<compile_context>
chip_gen: v6e
topology: v6e:2x2x1
jax: 0.10.0
libtpu: 0.0.40
codegen_flags: <defaults>
</compile_context>

<pallas_src>
import functools
import math

import jax
import jax.numpy as jnp
from jax.experimental import pallas as pl
from jax.experimental.pallas import tpu as pltpu

NUM_HEADS = 4
_SQRT1_2 = 0.7071067811865476


def _gelu_exact(x):
    # nn.GELU() default = exact erf formulation (matches PyTorch)
    return 0.5 * x * (1.0 + jax.lax.erf(x * _SQRT1_2))


def _layernorm_cols(x_t, w_col, b_col, eps=1e-5):
    """LayerNorm over the channel axis of a (C, T) tile (channels on sublanes)."""
    mu = jnp.mean(x_t, axis=0, keepdims=True)                   # (1, T)
    var = jnp.mean((x_t - mu) ** 2, axis=0, keepdims=True)      # (1, T)
    return (x_t - mu) * jax.lax.rsqrt(var + eps) * w_col + b_col


def attn_block_kernel(x_ref, wqkv_ref, bqkv_ref, wmats_ref, vecs_ref, o_ref,
                      attn_scr, *, n_tok, n_fold):
    x_t = x_ref[...]                       # (C, T) f32, T = n_fold * n_tok
    C = x_t.shape[0]
    D = C // NUM_HEADS

    vecs = vecs_ref[...]                   # (C, 7) f32 column pack
    ln1_w, ln1_b = vecs[:, 0:1], vecs[:, 1:2]
    b_o = vecs[:, 2:3]
    ln2_w, ln2_b = vecs[:, 3:4], vecs[:, 4:5]
    b_1, b_2 = vecs[:, 5:6], vecs[:, 6:7]

    # --- first LayerNorm (self.ln) over channels ---
    x_ln = _layernorm_cols(x_t, ln1_w, ln1_b)                    # (C, T) f32

    # --- fused QKV projection (q rows pre-scaled on host); single bf16 copy ---
    qkv = (jnp.dot(wqkv_ref[...], x_ln.astype(jnp.bfloat16),
                   preferred_element_type=jnp.float32)
           + bqkv_ref[...]).astype(jnp.bfloat16)                 # (3C, T) bf16

    # --- per-(batch-fold, head) attention; outputs written into VMEM scratch ---
    for bt in range(n_fold):               # static unrolled loop over folded batch elems
        t0, t1 = bt * n_tok, (bt + 1) * n_tok
        for h in range(NUM_HEADS):         # static unrolled loop over 4 heads
            qt = qkv[h * D:(h + 1) * D, t0:t1]                   # (D, N) (already scaled)
            kt = qkv[C + h * D:C + (h + 1) * D, t0:t1]           # (D, N)
            vt = qkv[2 * C + h * D:2 * C + (h + 1) * D, t0:t1]   # (D, N)

            # sT[k, q] = sum_d kt[d, k] * qt[d, q] -- contract over D, no kt.T copy
            sT = jax.lax.dot_general(kt, qt, (((0,), (0,)), ((), ())),
                                     preferred_element_type=jnp.float32)   # (N, N)
            sT = sT - jnp.max(sT, axis=0, keepdims=True)         # softmax over keys = ax0
            pT = jnp.exp(sT)
            pT = pT * pl.reciprocal(jnp.sum(pT, axis=0, keepdims=True), approx=True)

            # out_h^T = v_h^T @ p^T : (D, N), stored at sublane offset h*D
            attn_scr[h * D:(h + 1) * D, t0:t1] = jnp.dot(
                vt, pT.astype(jnp.bfloat16), preferred_element_type=jnp.float32)

    # --- output projection + residual 1 ---
    attn_t = (jnp.dot(wmats_ref[0], attn_scr[...].astype(jnp.bfloat16),
                      preferred_element_type=jnp.float32) + b_o + x_t)    # (C, T) f32

    # --- ff_self: LayerNorm -> Linear -> GELU -> Linear, + residual 2 ---
    h_ln = _layernorm_cols(attn_t, ln2_w, ln2_b)
    hid = jnp.dot(wmats_ref[1], h_ln.astype(jnp.bfloat16),
                  preferred_element_type=jnp.float32) + b_1
    hid = _gelu_exact(hid)
    hid = jnp.dot(wmats_ref[2], hid.astype(jnp.bfloat16),
                  preferred_element_type=jnp.float32) + b_2

    o_ref[...] = hid + attn_t              # lane-dense (C, T) store


def _pack_params(params, C):
    """Pack PyTorch-layout parameters into 4 kernel inputs (trace-time, tiny)."""
    D = C // NUM_HEADS
    scale = 1.0 / math.sqrt(D)
    qscale = jnp.concatenate([jnp.full((C,), scale, jnp.float32),
                              jnp.ones((2 * C,), jnp.float32)])
    # MultiheadAttention in_proj_weight is (3C, C): y^T = W @ x^T, so use it directly.
    w_qkv = (params['in_proj_weight'] * qscale[:, None]).astype(jnp.bfloat16)      # (3C, C)
    b_qkv = (params['in_proj_bias'] * qscale).astype(jnp.float32).reshape(3 * C, 1)
    w_mats = jnp.stack([params['out_proj_weight'],
                        params['ff_w1'],
                        params['ff_w2']], axis=0).astype(jnp.bfloat16)              # (3, C, C)
    vec_cols = jnp.stack([params['ln1_w'], params['ln1_b'],
                          params['out_proj_bias'],
                          params['ln2_w'], params['ln2_b'],
                          params['ff_b1'], params['ff_b2']],
                         axis=1).astype(jnp.float32)                                # (C, 7)
    return w_qkv, b_qkv, w_mats, vec_cols


def _choose_fold(B, N):
    """Smallest divisor Bt of B such that Bt*N is lane-dense (multiple of 128), else B."""
    if N % 128 == 0:
        return 1
    for bt in range(1, B + 1):
        if B % bt == 0 and (bt * N) % 128 == 0:
            return bt
    return B


@jax.jit
def self_attention_block(x, params):
    """x: (B, C, H, W) float32, NCHW like the PyTorch module. Returns (B, C, H, W)."""
    B, C, H, W = x.shape
    N = H * W
    Bt = _choose_fold(B, N)                # batch elems folded onto the lane axis
    T = Bt * N                             # tokens per grid step
    G = B // Bt                            # grid length

    # One-time relayout (B,C,N) -> (C, B*N): tokens of all batch elems on the lane axis.
    x_fold = x.reshape(B, C, N).transpose(1, 0, 2).reshape(C, B * N)

    w_qkv, b_qkv, w_mats, vec_cols = _pack_params(params, C)

    # Advisory cost estimate so XLA schedules around the custom call sensibly.
    cost = pl.CostEstimate(
        flops=int(B * (12 * N * C * C + 4 * C * N * N)),
        transcendentals=int(B * (NUM_HEADS * N * N + 2 * C * N)),
        bytes_accessed=int(8 * B * C * N + 6 * 2 * C * C + 4 * (3 * C + 7 * C)),
    )

    # Explicit scoped-VMEM budget (defaults are 16 MiB v5e / 32 MiB v6e,v7x).
    est = 4 * (7 * C * T + 2 * N * N + 4 * C * C) + 2 * 6 * C * C
    try:
        phys_vmem = pltpu.get_tpu_info().vmem_capacity_bytes
    except Exception:
        phys_vmem = 64 * 1024 * 1024
    vmem_limit = int(min(phys_vmem * 3 // 4, max(32 * 1024 * 1024, 2 * est)))

    kernel = functools.partial(attn_block_kernel, n_tok=N, n_fold=Bt)

    out = pl.pallas_call(
        kernel,
        out_shape=jax.ShapeDtypeStruct((C, B * N), jnp.float32),
        grid_spec=pltpu.PrefetchScalarGridSpec(
            num_scalar_prefetch=0,
            grid=(G,),
            in_specs=[
                pl.BlockSpec((C, T), lambda g: (0, g)),         # x slab (Bt batch elems)
                pl.BlockSpec((3 * C, C), lambda g: (0, 0)),     # fused QKV weight (bf16)
                pl.BlockSpec((3 * C, 1), lambda g: (0, 0)),     # fused QKV bias column
                pl.BlockSpec((3, C, C), lambda g: (0, 0, 0)),   # [Wo, W1, W2] (bf16)
                pl.BlockSpec((C, 7), lambda g: (0, 0)),         # packed LN/bias columns
            ],
            out_specs=pl.BlockSpec((C, T), lambda g: (0, g)),
            scratch_shapes=[pltpu.VMEM((C, T), jnp.float32)],   # head-output accumulator
        ),
        compiler_params=pltpu.CompilerParams(
            dimension_semantics=("parallel",),                  # batch groups across TCs
            vmem_limit_bytes=vmem_limit),
        cost_estimate=cost,
    )(x_fold, w_qkv, b_qkv, w_mats, vec_cols)

    # Un-fold: (C, B*N) -> (B, C, H, W)
    return out.reshape(C, B, N).transpose(1, 0, 2).reshape(B, C, H, W)


def reference_jax(x, params):
    """Pure-JAX f32 reference mirroring the PyTorch forward semantics."""
    B, C, Hs, Ws = x.shape
    N = Hs * Ws
    D = C // NUM_HEADS
    xs = jnp.transpose(x.reshape(B, C, N), (0, 2, 1))   # (B, N, C)

    def ln(z, w, b, eps=1e-5):
        mu = jnp.mean(z, axis=-1, keepdims=True)
        var = jnp.mean((z - mu) ** 2, axis=-1, keepdims=True)
        return (z - mu) * jax.lax.rsqrt(var + eps) * w + b

    x_ln = ln(xs, params['ln1_w'], params['ln1_b'])
    qkv = x_ln @ params['in_proj_weight'].T + params['in_proj_bias']   # (B, N, 3C)
    q, k, v = jnp.split(qkv, 3, axis=-1)

    def split_heads(z):
        return z.reshape(B, N, NUM_HEADS, D).transpose(0, 2, 1, 3)

    q, k, v = split_heads(q), split_heads(k), split_heads(v)
    s = jnp.einsum('bhqd,bhkd->bhqk', q, k) / jnp.sqrt(jnp.float32(D))
    p = jax.nn.softmax(s, axis=-1)
    a = jnp.einsum('bhqk,bhkd->bhqd', p, v).transpose(0, 2, 1, 3).reshape(B, N, C)
    a = a @ params['out_proj_weight'].T + params['out_proj_bias']
    a = a + xs

    h_ln = ln(a, params['ln2_w'], params['ln2_b'])
    hid = _gelu_exact(h_ln @ params['ff_w1'].T + params['ff_b1'])
    hid = hid @ params['ff_w2'].T + params['ff_b2']
    out = hid + a
    return jnp.transpose(out, (0, 2, 1)).reshape(B, C, Hs, Ws)


def init_params(key, C):
    """Synthetic parameters in PyTorch layout: Linear weights are (out, in)."""
    ks = jax.random.split(key, 12)
    s = 0.05

    def mat(k, shape):
        return jax.random.normal(k, shape, jnp.float32) * s

    return {
        'ln1_w': 1.0 + 0.1 * jax.random.normal(ks[0], (C,), jnp.float32),
        'ln1_b': mat(ks[1], (C,)),
        'in_proj_weight': mat(ks[2], (3 * C, C)),    # [Wq; Wk; Wv]
        'in_proj_bias': mat(ks[3], (3 * C,)),
        'out_proj_weight': mat(ks[4], (C, C)),
        'out_proj_bias': mat(ks[5], (C,)),
        'ln2_w': 1.0 + 0.1 * jax.random.normal(ks[6], (C,), jnp.float32),
        'ln2_b': mat(ks[7], (C,)),
        'ff_w1': mat(ks[8], (C, C)),
        'ff_b1': mat(ks[9], (C,)),
        'ff_w2': mat(ks[10], (C, C)),
        'ff_b2': mat(ks[11], (C,)),
    }


if __name__ == "__main__":
    key = jax.random.PRNGKey(0)
    kx, kp = jax.random.split(key)

    B, C, size = 2, 32, 8      # channels divisible by 4 heads; N = size*size = 64
    x = jax.random.normal(kx, (B, C, size, size), jnp.float32)
    params = init_params(kp, C)

    out = jax.block_until_ready(self_attention_block(x, params))
    ref = jax.block_until_ready(reference_jax(x, params))

    assert out.shape == (B, C, size, size)
    assert jnp.allclose(out, ref, atol=2e-2, rtol=2e-2), "mismatch vs pure-JAX reference"

    print("KERNEL_OK")
</pallas_src>

<mosaic_0001>
module attributes {stable_mosaic.version = 11 : i64} {
  func.func @attn_block_kernel(%arg0: i32, %arg1: memref<32x128xf32, #tpu.memory_space<vmem>>, %arg2: memref<96x32xbf16, #tpu.memory_space<vmem>>, %arg3: memref<96x1xf32, #tpu.memory_space<vmem>>, %arg4: memref<3x32x32xbf16, #tpu.memory_space<vmem>>, %arg5: memref<32x7xf32, #tpu.memory_space<vmem>>, %arg6: memref<32x128xf32, #tpu.memory_space<vmem>>, %arg7: memref<32x128xf32, #tpu.memory_space<vmem>>) attributes {dimension_semantics = [#tpu.dimension_semantics<parallel>], iteration_bounds = array<i64: 1>, scalar_prefetch = 0 : i64, scratch_operands = 1 : i64, tpu.core_type = #tpu.core_type<tc>, window_params = [{transform_indices = @transform_0, window_bounds = array<i64: 32, 128>}, {pipeline_mode = #tpu.pipeline_mode<synchronous>, transform_indices = @transform_1, window_bounds = array<i64: 96, 32>}, {pipeline_mode = #tpu.pipeline_mode<synchronous>, transform_indices = @transform_2, window_bounds = array<i64: 96, 1>}, {pipeline_mode = #tpu.pipeline_mode<synchronous>, transform_indices = @transform_3, window_bounds = array<i64: 3, 32, 32>}, {pipeline_mode = #tpu.pipeline_mode<synchronous>, transform_indices = @transform_4, window_bounds = array<i64: 32, 7>}, {transform_indices = @transform_5, window_bounds = array<i64: 32, 128>}]} {
    %c0 = arith.constant 0 : index
    %c0_0 = arith.constant 0 : index
    %0 = vector.load %arg1[%c0, %c0_0] : memref<32x128xf32, #tpu.memory_space<vmem>>, vector<32x128xf32>
    %c0_1 = arith.constant 0 : index
    %c0_2 = arith.constant 0 : index
    %1 = vector.load %arg5[%c0_1, %c0_2] : memref<32x7xf32, #tpu.memory_space<vmem>>, vector<32x7xf32>
    %2 = vector.extract_strided_slice %1 {offsets = [0, 0], sizes = [32, 1], strides = [1, 1]} : vector<32x7xf32> to vector<32x1xf32>
    %3 = vector.extract_strided_slice %1 {offsets = [0, 1], sizes = [32, 1], strides = [1, 1]} : vector<32x7xf32> to vector<32x1xf32>
    %4 = vector.extract_strided_slice %1 {offsets = [0, 2], sizes = [32, 1], strides = [1, 1]} : vector<32x7xf32> to vector<32x1xf32>
    %5 = vector.extract_strided_slice %1 {offsets = [0, 3], sizes = [32, 1], strides = [1, 1]} : vector<32x7xf32> to vector<32x1xf32>
    %6 = vector.extract_strided_slice %1 {offsets = [0, 4], sizes = [32, 1], strides = [1, 1]} : vector<32x7xf32> to vector<32x1xf32>
    %7 = vector.extract_strided_slice %1 {offsets = [0, 5], sizes = [32, 1], strides = [1, 1]} : vector<32x7xf32> to vector<32x1xf32>
    %8 = vector.extract_strided_slice %1 {offsets = [0, 6], sizes = [32, 1], strides = [1, 1]} : vector<32x7xf32> to vector<32x1xf32>
    %cst = arith.constant dense<0.000000e+00> : vector<128xf32>
    %9 = vector.multi_reduction <add>, %0, %cst [0] : vector<32x128xf32> to vector<128xf32>
    %10 = vector.shape_cast %9 : vector<128xf32> to vector<1x128xf32>
    %cst_3 = arith.constant 3.200000e+01 : f32
    %11 = vector.broadcast %cst_3 : f32 to vector<1x128xf32>
    %12 = arith.divf %10, %11 : vector<1x128xf32>
    %13 = vector.broadcast %12 : vector<1x128xf32> to vector<32x128xf32>
    %14 = arith.subf %0, %13 : vector<32x128xf32>
    %15 = arith.mulf %14, %14 : vector<32x128xf32>
    %cst_4 = arith.constant dense<0.000000e+00> : vector<128xf32>
    %16 = vector.multi_reduction <add>, %15, %cst_4 [0] : vector<32x128xf32> to vector<128xf32>
    %17 = vector.shape_cast %16 : vector<128xf32> to vector<1x128xf32>
    %cst_5 = arith.constant 3.200000e+01 : f32
    %18 = vector.broadcast %cst_5 : f32 to vector<1x128xf32>
    %19 = arith.divf %17, %18 : vector<1x128xf32>
    %20 = vector.broadcast %12 : vector<1x128xf32> to vector<32x128xf32>
    %21 = arith.subf %0, %20 : vector<32x128xf32>
    %cst_6 = arith.constant 9.99999974E-6 : f32
    %22 = vector.broadcast %cst_6 : f32 to vector<1x128xf32>
    %23 = arith.addf %19, %22 : vector<1x128xf32>
    %24 = math.rsqrt %23 : vector<1x128xf32>
    %25 = vector.broadcast %24 : vector<1x128xf32> to vector<32x128xf32>
    %26 = arith.mulf %21, %25 : vector<32x128xf32>
    %27 = vector.broadcast %2 : vector<32x1xf32> to vector<32x128xf32>
    %28 = arith.mulf %26, %27 : vector<32x128xf32>
    %29 = vector.broadcast %3 : vector<32x1xf32> to vector<32x128xf32>
    %30 = arith.addf %28, %29 : vector<32x128xf32>
    %c0_7 = arith.constant 0 : index
    %c0_8 = arith.constant 0 : index
    %31 = vector.load %arg2[%c0_7, %c0_8] : memref<96x32xbf16, #tpu.memory_space<vmem>>, vector<96x32xbf16>
    %32 = arith.truncf %30 : vector<32x128xf32> to vector<32x128xbf16>
    %cst_9 = arith.constant dense<0.000000e+00> : vector<96x128xf32>
    %33 = tpu.matmul %31, %32, %cst_9 {dimension_numbers = #tpu.dot_dimension_numbers<[1], [0], [0], [1], [0, 0, 1, 1], [], []>} : vector<96x32xbf16>, vector<32x128xbf16>, vector<96x128xf32> -> vector<96x128xf32>
    %c0_10 = arith.constant 0 : index
    %c0_11 = arith.constant 0 : index
    %34 = vector.load %arg3[%c0_10, %c0_11] : memref<96x1xf32, #tpu.memory_space<vmem>>, vector<96x1xf32>
    %35 = vector.broadcast %34 : vector<96x1xf32> to vector<96x128xf32>
    %36 = arith.addf %33, %35 : vector<96x128xf32>
    %37 = arith.truncf %36 : vector<96x128xf32> to vector<96x128xbf16>
    %38 = vector.extract_strided_slice %37 {offsets = [0, 0], sizes = [8, 64], strides = [1, 1]} : vector<96x128xbf16> to vector<8x64xbf16>
    %39 = vector.extract_strided_slice %37 {offsets = [32, 0], sizes = [8, 64], strides = [1, 1]} : vector<96x128xbf16> to vector<8x64xbf16>
    %40 = vector.extract_strided_slice %37 {offsets = [64, 0], sizes = [8, 64], strides = [1, 1]} : vector<96x128xbf16> to vector<8x64xbf16>
    %cst_12 = arith.constant dense<0.000000e+00> : vector<64x64xf32>
    %41 = tpu.matmul %39, %38, %cst_12 {dimension_numbers = #tpu.dot_dimension_numbers<[0], [0], [1], [1], [0, 1, 1, 1], [], []>} : vector<8x64xbf16>, vector<8x64xbf16>, vector<64x64xf32> -> vector<64x64xf32>
    %cst_13 = arith.constant dense<0xFF800000> : vector<64xf32>
    %42 = vector.multi_reduction <maximumf>, %41, %cst_13 [0] : vector<64x64xf32> to vector<64xf32>
    %43 = vector.shape_cast %42 : vector<64xf32> to vector<1x64xf32>
    %44 = vector.broadcast %43 : vector<1x64xf32> to vector<64x64xf32>
    %45 = arith.subf %41, %44 : vector<64x64xf32>
    %46 = math.exp %45 : vector<64x64xf32>
    %cst_14 = arith.constant dense<0.000000e+00> : vector<64xf32>
    %47 = vector.multi_reduction <add>, %46, %cst_14 [0] : vector<64x64xf32> to vector<64xf32>
    %48 = vector.shape_cast %47 : vector<64xf32> to vector<1x64xf32>
    %49 = tpu.reciprocal %48 {approx = true} : vector<1x64xf32> -> vector<1x64xf32>
    %50 = vector.broadcast %49 : vector<1x64xf32> to vector<64x64xf32>
    %51 = arith.mulf %46, %50 : vector<64x64xf32>
    %52 = arith.truncf %51 : vector<64x64xf32> to vector<64x64xbf16>
    %cst_15 = arith.constant dense<0.000000e+00> : vector<8x64xf32>
    %53 = tpu.matmul %40, %52, %cst_15 {dimension_numbers = #tpu.dot_dimension_numbers<[1], [0], [0], [1], [0, 0, 1, 1], [], []>} : vector<8x64xbf16>, vector<64x64xbf16>, vector<8x64xf32> -> vector<8x64xf32>
    %c0_16 = arith.constant 0 : index
    %c0_17 = arith.constant 0 : index
    %54 = vector.load %arg7[%c0_16, %c0_17] : memref<32x128xf32, #tpu.memory_space<vmem>>, vector<8x64xf32>
    tpu.vector_store %arg7[%c0_16, %c0_17], %53 {strides = array<i32>} : memref<32x128xf32, #tpu.memory_space<vmem>>, vector<8x64xf32>,
    %55 = vector.extract_strided_slice %37 {offsets = [8, 0], sizes = [8, 64], strides = [1, 1]} : vector<96x128xbf16> to vector<8x64xbf16>
    %56 = vector.extract_strided_slice %37 {offsets = [40, 0], sizes = [8, 64], strides = [1, 1]} : vector<96x128xbf16> to vector<8x64xbf16>
    %57 = vector.extract_strided_slice %37 {offsets = [72, 0], sizes = [8, 64], strides = [1, 1]} : vector<96x128xbf16> to vector<8x64xbf16>
    %cst_18 = arith.constant dense<0.000000e+00> : vector<64x64xf32>
    %58 = tpu.matmul %56, %55, %cst_18 {dimension_numbers = #tpu.dot_dimension_numbers<[0], [0], [1], [1], [0, 1, 1, 1], [], []>} : vector<8x64xbf16>, vector<8x64xbf16>, vector<64x64xf32> -> vector<64x64xf32>
    %cst_19 = arith.constant dense<0xFF800000> : vector<64xf32>
    %59 = vector.multi_reduction <maximumf>, %58, %cst_19 [0] : vector<64x64xf32> to vector<64xf32>
    %60 = vector.shape_cast %59 : vector<64xf32> to vector<1x64xf32>
    %61 = vector.broadcast %60 : vector<1x64xf32> to vector<64x64xf32>
    %62 = arith.subf %58, %61 : vector<64x64xf32>
    %63 = math.exp %62 : vector<64x64xf32>
    %cst_20 = arith.constant dense<0.000000e+00> : vector<64xf32>
    %64 = vector.multi_reduction <add>, %63, %cst_20 [0] : vector<64x64xf32> to vector<64xf32>
    %65 = vector.shape_cast %64 : vector<64xf32> to vector<1x64xf32>
    %66 = tpu.reciprocal %65 {approx = true} : vector<1x64xf32> -> vector<1x64xf32>
    %67 = vector.broadcast %66 : vector<1x64xf32> to vector<64x64xf32>
    %68 = arith.mulf %63, %67 : vector<64x64xf32>
    %69 = arith.truncf %68 : vector<64x64xf32> to vector<64x64xbf16>
    %cst_21 = arith.constant dense<0.000000e+00> : vector<8x64xf32>
    %70 = tpu.matmul %57, %69, %cst_21 {dimension_numbers = #tpu.dot_dimension_numbers<[1], [0], [0], [1], [0, 0, 1, 1], [], []>} : vector<8x64xbf16>, vector<64x64xbf16>, vector<8x64xf32> -> vector<8x64xf32>
    %c8 = arith.constant 8 : index
    %c0_22 = arith.constant 0 : index
    %71 = vector.load %arg7[%c8, %c0_22] : memref<32x128xf32, #tpu.memory_space<vmem>>, vector<8x64xf32>
    tpu.vector_store %arg7[%c8, %c0_22], %70 {strides = array<i32>} : memref<32x128xf32, #tpu.memory_space<vmem>>, vector<8x64xf32>,
    %72 = vector.extract_strided_slice %37 {offsets = [16, 0], sizes = [8, 64], strides = [1, 1]} : vector<96x128xbf16> to vector<8x64xbf16>
    %73 = vector.extract_strided_slice %37 {offsets = [48, 0], sizes = [8, 64], strides = [1, 1]} : vector<96x128xbf16> to vector<8x64xbf16>
    %74 = vector.extract_strided_slice %37 {offsets = [80, 0], sizes = [8, 64], strides = [1, 1]} : vector<96x128xbf16> to vector<8x64xbf16>
    %cst_23 = arith.constant dense<0.000000e+00> : vector<64x64xf32>
    %75 = tpu.matmul %73, %72, %cst_23 {dimension_numbers = #tpu.dot_dimension_numbers<[0], [0], [1], [1], [0, 1, 1, 1], [], []>} : vector<8x64xbf16>, vector<8x64xbf16>, vector<64x64xf32> -> vector<64x64xf32>
    %cst_24 = arith.constant dense<0xFF800000> : vector<64xf32>
    %76 = vector.multi_reduction <maximumf>, %75, %cst_24 [0] : vector<64x64xf32> to vector<64xf32>
    %77 = vector.shape_cast %76 : vector<64xf32> to vector<1x64xf32>
    %78 = vector.broadcast %77 : vector<1x64xf32> to vector<64x64xf32>
    %79 = arith.subf %75, %78 : vector<64x64xf32>
    %80 = math.exp %79 : vector<64x64xf32>
    %cst_25 = arith.constant dense<0.000000e+00> : vector<64xf32>
    %81 = vector.multi_reduction <add>, %80, %cst_25 [0] : vector<64x64xf32> to vector<64xf32>
    %82 = vector.shape_cast %81 : vector<64xf32> to vector<1x64xf32>
    %83 = tpu.reciprocal %82 {approx = true} : vector<1x64xf32> -> vector<1x64xf32>
    %84 = vector.broadcast %83 : vector<1x64xf32> to vector<64x64xf32>
    %85 = arith.mulf %80, %84 : vector<64x64xf32>
    %86 = arith.truncf %85 : vector<64x64xf32> to vector<64x64xbf16>
    %cst_26 = arith.constant dense<0.000000e+00> : vector<8x64xf32>
    %87 = tpu.matmul %74, %86, %cst_26 {dimension_numbers = #tpu.dot_dimension_numbers<[1], [0], [0], [1], [0, 0, 1, 1], [], []>} : vector<8x64xbf16>, vector<64x64xbf16>, vector<8x64xf32> -> vector<8x64xf32>
    %c16 = arith.constant 16 : index
    %c0_27 = arith.constant 0 : index
    %88 = vector.load %arg7[%c16, %c0_27] : memref<32x128xf32, #tpu.memory_space<vmem>>, vector<8x64xf32>
    tpu.vector_store %arg7[%c16, %c0_27], %87 {strides = array<i32>} : memref<32x128xf32, #tpu.memory_space<vmem>>, vector<8x64xf32>,
    %89 = vector.extract_strided_slice %37 {offsets = [24, 0], sizes = [8, 64], strides = [1, 1]} : vector<96x128xbf16> to vector<8x64xbf16>
    %90 = vector.extract_strided_slice %37 {offsets = [56, 0], sizes = [8, 64], strides = [1, 1]} : vector<96x128xbf16> to vector<8x64xbf16>
    %91 = vector.extract_strided_slice %37 {offsets = [88, 0], sizes = [8, 64], strides = [1, 1]} : vector<96x128xbf16> to vector<8x64xbf16>
    %cst_28 = arith.constant dense<0.000000e+00> : vector<64x64xf32>
    %92 = tpu.matmul %90, %89, %cst_28 {dimension_numbers = #tpu.dot_dimension_numbers<[0], [0], [1], [1], [0, 1, 1, 1], [], []>} : vector<8x64xbf16>, vector<8x64xbf16>, vector<64x64xf32> -> vector<64x64xf32>
    %cst_29 = arith.constant dense<0xFF800000> : vector<64xf32>
    %93 = vector.multi_reduction <maximumf>, %92, %cst_29 [0] : vector<64x64xf32> to vector<64xf32>
    %94 = vector.shape_cast %93 : vector<64xf32> to vector<1x64xf32>
    %95 = vector.broadcast %94 : vector<1x64xf32> to vector<64x64xf32>
    %96 = arith.subf %92, %95 : vector<64x64xf32>
    %97 = math.exp %96 : vector<64x64xf32>
    %cst_30 = arith.constant dense<0.000000e+00> : vector<64xf32>
    %98 = vector.multi_reduction <add>, %97, %cst_30 [0] : vector<64x64xf32> to vector<64xf32>
    %99 = vector.shape_cast %98 : vector<64xf32> to vector<1x64xf32>
    %100 = tpu.reciprocal %99 {approx = true} : vector<1x64xf32> -> vector<1x64xf32>
    %101 = vector.broadcast %100 : vector<1x64xf32> to vector<64x64xf32>
    %102 = arith.mulf %97, %101 : vector<64x64xf32>
    %103 = arith.truncf %102 : vector<64x64xf32> to vector<64x64xbf16>
    %cst_31 = arith.constant dense<0.000000e+00> : vector<8x64xf32>
    %104 = tpu.matmul %91, %103, %cst_31 {dimension_numbers = #tpu.dot_dimension_numbers<[1], [0], [0], [1], [0, 0, 1, 1], [], []>} : vector<8x64xbf16>, vector<64x64xbf16>, vector<8x64xf32> -> vector<8x64xf32>
    %c24 = arith.constant 24 : index
    %c0_32 = arith.constant 0 : index
    %105 = vector.load %arg7[%c24, %c0_32] : memref<32x128xf32, #tpu.memory_space<vmem>>, vector<8x64xf32>
    tpu.vector_store %arg7[%c24, %c0_32], %104 {strides = array<i32>} : memref<32x128xf32, #tpu.memory_space<vmem>>, vector<8x64xf32>,
    %106 = vector.extract_strided_slice %37 {offsets = [0, 64], sizes = [8, 64], strides = [1, 1]} : vector<96x128xbf16> to vector<8x64xbf16>
    %107 = vector.extract_strided_slice %37 {offsets = [32, 64], sizes = [8, 64], strides = [1, 1]} : vector<96x128xbf16> to vector<8x64xbf16>
    %108 = vector.extract_strided_slice %37 {offsets = [64, 64], sizes = [8, 64], strides = [1, 1]} : vector<96x128xbf16> to vector<8x64xbf16>
    %cst_33 = arith.constant dense<0.000000e+00> : vector<64x64xf32>
    %109 = tpu.matmul %107, %106, %cst_33 {dimension_numbers = #tpu.dot_dimension_numbers<[0], [0], [1], [1], [0, 1, 1, 1], [], []>} : vector<8x64xbf16>, vector<8x64xbf16>, vector<64x64xf32> -> vector<64x64xf32>
    %cst_34 = arith.constant dense<0xFF800000> : vector<64xf32>
    %110 = vector.multi_reduction <maximumf>, %109, %cst_34 [0] : vector<64x64xf32> to vector<64xf32>
    %111 = vector.shape_cast %110 : vector<64xf32> to vector<1x64xf32>
    %112 = vector.broadcast %111 : vector<1x64xf32> to vector<64x64xf32>
    %113 = arith.subf %109, %112 : vector<64x64xf32>
    %114 = math.exp %113 : vector<64x64xf32>
    %cst_35 = arith.constant dense<0.000000e+00> : vector<64xf32>
    %115 = vector.multi_reduction <add>, %114, %cst_35 [0] : vector<64x64xf32> to vector<64xf32>
    %116 = vector.shape_cast %115 : vector<64xf32> to vector<1x64xf32>
    %117 = tpu.reciprocal %116 {approx = true} : vector<1x64xf32> -> vector<1x64xf32>
    %118 = vector.broadcast %117 : vector<1x64xf32> to vector<64x64xf32>
    %119 = arith.mulf %114, %118 : vector<64x64xf32>
    %120 = arith.truncf %119 : vector<64x64xf32> to vector<64x64xbf16>
    %cst_36 = arith.constant dense<0.000000e+00> : vector<8x64xf32>
    %121 = tpu.matmul %108, %120, %cst_36 {dimension_numbers = #tpu.dot_dimension_numbers<[1], [0], [0], [1], [0, 0, 1, 1], [], []>} : vector<8x64xbf16>, vector<64x64xbf16>, vector<8x64xf32> -> vector<8x64xf32>
    %c0_37 = arith.constant 0 : index
    %c64 = arith.constant 64 : index
    %122 = vector.load %arg7[%c0_37, %c64] : memref<32x128xf32, #tpu.memory_space<vmem>>, vector<8x64xf32>
    tpu.vector_store %arg7[%c0_37, %c64], %121 {strides = array<i32>} : memref<32x128xf32, #tpu.memory_space<vmem>>, vector<8x64xf32>,
    %123 = vector.extract_strided_slice %37 {offsets = [8, 64], sizes = [8, 64], strides = [1, 1]} : vector<96x128xbf16> to vector<8x64xbf16>
    %124 = vector.extract_strided_slice %37 {offsets = [40, 64], sizes = [8, 64], strides = [1, 1]} : vector<96x128xbf16> to vector<8x64xbf16>
    %125 = vector.extract_strided_slice %37 {offsets = [72, 64], sizes = [8, 64], strides = [1, 1]} : vector<96x128xbf16> to vector<8x64xbf16>
    %cst_38 = arith.constant dense<0.000000e+00> : vector<64x64xf32>
    %126 = tpu.matmul %124, %123, %cst_38 {dimension_numbers = #tpu.dot_dimension_numbers<[0], [0], [1], [1], [0, 1, 1, 1], [], []>} : vector<8x64xbf16>, vector<8x64xbf16>, vector<64x64xf32> -> vector<64x64xf32>
    %cst_39 = arith.constant dense<0xFF800000> : vector<64xf32>
    %127 = vector.multi_reduction <maximumf>, %126, %cst_39 [0] : vector<64x64xf32> to vector<64xf32>
    %128 = vector.shape_cast %127 : vector<64xf32> to vector<1x64xf32>
    %129 = vector.broadcast %128 : vector<1x64xf32> to vector<64x64xf32>
    %130 = arith.subf %126, %129 : vector<64x64xf32>
    %131 = math.exp %130 : vector<64x64xf32>
    %cst_40 = arith.constant dense<0.000000e+00> : vector<64xf32>
    %132 = vector.multi_reduction <add>, %131, %cst_40 [0] : vector<64x64xf32> to vector<64xf32>
    %133 = vector.shape_cast %132 : vector<64xf32> to vector<1x64xf32>
    %134 = tpu.reciprocal %133 {approx = true} : vector<1x64xf32> -> vector<1x64xf32>
    %135 = vector.broadcast %134 : vector<1x64xf32> to vector<64x64xf32>
    %136 = arith.mulf %131, %135 : vector<64x64xf32>
    %137 = arith.truncf %136 : vector<64x64xf32> to vector<64x64xbf16>
    %cst_41 = arith.constant dense<0.000000e+00> : vector<8x64xf32>
    %138 = tpu.matmul %125, %137, %cst_41 {dimension_numbers = #tpu.dot_dimension_numbers<[1], [0], [0], [1], [0, 0, 1, 1], [], []>} : vector<8x64xbf16>, vector<64x64xbf16>, vector<8x64xf32> -> vector<8x64xf32>
    %c8_42 = arith.constant 8 : index
    %c64_43 = arith.constant 64 : index
    %139 = vector.load %arg7[%c8_42, %c64_43] : memref<32x128xf32, #tpu.memory_space<vmem>>, vector<8x64xf32>
    tpu.vector_store %arg7[%c8_42, %c64_43], %138 {strides = array<i32>} : memref<32x128xf32, #tpu.memory_space<vmem>>, vector<8x64xf32>,
    %140 = vector.extract_strided_slice %37 {offsets = [16, 64], sizes = [8, 64], strides = [1, 1]} : vector<96x128xbf16> to vector<8x64xbf16>
    %141 = vector.extract_strided_slice %37 {offsets = [48, 64], sizes = [8, 64], strides = [1, 1]} : vector<96x128xbf16> to vector<8x64xbf16>
    %142 = vector.extract_strided_slice %37 {offsets = [80, 64], sizes = [8, 64], strides = [1, 1]} : vector<96x128xbf16> to vector<8x64xbf16>
    %cst_44 = arith.constant dense<0.000000e+00> : vector<64x64xf32>
    %143 = tpu.matmul %141, %140, %cst_44 {dimension_numbers = #tpu.dot_dimension_numbers<[0], [0], [1], [1], [0, 1, 1, 1], [], []>} : vector<8x64xbf16>, vector<8x64xbf16>, vector<64x64xf32> -> vector<64x64xf32>
    %cst_45 = arith.constant dense<0xFF800000> : vector<64xf32>
    %144 = vector.multi_reduction <maximumf>, %143, %cst_45 [0] : vector<64x64xf32> to vector<64xf32>
    %145 = vector.shape_cast %144 : vector<64xf32> to vector<1x64xf32>
    %146 = vector.broadcast %145 : vector<1x64xf32> to vector<64x64xf32>
    %147 = arith.subf %143, %146 : vector<64x64xf32>
    %148 = math.exp %147 : vector<64x64xf32>
    %cst_46 = arith.constant dense<0.000000e+00> : vector<64xf32>
    %149 = vector.multi_reduction <add>, %148, %cst_46 [0] : vector<64x64xf32> to vector<64xf32>
    %150 = vector.shape_cast %149 : vector<64xf32> to vector<1x64xf32>
    %151 = tpu.reciprocal %150 {approx = true} : vector<1x64xf32> -> vector<1x64xf32>
    %152 = vector.broadcast %151 : vector<1x64xf32> to vector<64x64xf32>
    %153 = arith.mulf %148, %152 : vector<64x64xf32>
    %154 = arith.truncf %153 : vector<64x64xf32> to vector<64x64xbf16>
    %cst_47 = arith.constant dense<0.000000e+00> : vector<8x64xf32>
    %155 = tpu.matmul %142, %154, %cst_47 {dimension_numbers = #tpu.dot_dimension_numbers<[1], [0], [0], [1], [0, 0, 1, 1], [], []>} : vector<8x64xbf16>, vector<64x64xbf16>, vector<8x64xf32> -> vector<8x64xf32>
    %c16_48 = arith.constant 16 : index
    %c64_49 = arith.constant 64 : index
    %156 = vector.load %arg7[%c16_48, %c64_49] : memref<32x128xf32, #tpu.memory_space<vmem>>, vector<8x64xf32>
    tpu.vector_store %arg7[%c16_48, %c64_49], %155 {strides = array<i32>} : memref<32x128xf32, #tpu.memory_space<vmem>>, vector<8x64xf32>,
    %157 = vector.extract_strided_slice %37 {offsets = [24, 64], sizes = [8, 64], strides = [1, 1]} : vector<96x128xbf16> to vector<8x64xbf16>
    %158 = vector.extract_strided_slice %37 {offsets = [56, 64], sizes = [8, 64], strides = [1, 1]} : vector<96x128xbf16> to vector<8x64xbf16>
    %159 = vector.extract_strided_slice %37 {offsets = [88, 64], sizes = [8, 64], strides = [1, 1]} : vector<96x128xbf16> to vector<8x64xbf16>
    %cst_50 = arith.constant dense<0.000000e+00> : vector<64x64xf32>
    %160 = tpu.matmul %158, %157, %cst_50 {dimension_numbers = #tpu.dot_dimension_numbers<[0], [0], [1], [1], [0, 1, 1, 1], [], []>} : vector<8x64xbf16>, vector<8x64xbf16>, vector<64x64xf32> -> vector<64x64xf32>
    %cst_51 = arith.constant dense<0xFF800000> : vector<64xf32>
    %161 = vector.multi_reduction <maximumf>, %160, %cst_51 [0] : vector<64x64xf32> to vector<64xf32>
    %162 = vector.shape_cast %161 : vector<64xf32> to vector<1x64xf32>
    %163 = vector.broadcast %162 : vector<1x64xf32> to vector<64x64xf32>
    %164 = arith.subf %160, %163 : vector<64x64xf32>
    %165 = math.exp %164 : vector<64x64xf32>
    %cst_52 = arith.constant dense<0.000000e+00> : vector<64xf32>
    %166 = vector.multi_reduction <add>, %165, %cst_52 [0] : vector<64x64xf32> to vector<64xf32>
    %167 = vector.shape_cast %166 : vector<64xf32> to vector<1x64xf32>
    %168 = tpu.reciprocal %167 {approx = true} : vector<1x64xf32> -> vector<1x64xf32>
    %169 = vector.broadcast %168 : vector<1x64xf32> to vector<64x64xf32>
    %170 = arith.mulf %165, %169 : vector<64x64xf32>
    %171 = arith.truncf %170 : vector<64x64xf32> to vector<64x64xbf16>
    %cst_53 = arith.constant dense<0.000000e+00> : vector<8x64xf32>
    %172 = tpu.matmul %159, %171, %cst_53 {dimension_numbers = #tpu.dot_dimension_numbers<[1], [0], [0], [1], [0, 0, 1, 1], [], []>} : vector<8x64xbf16>, vector<64x64xbf16>, vector<8x64xf32> -> vector<8x64xf32>
    %c24_54 = arith.constant 24 : index
    %c64_55 = arith.constant 64 : index
    %173 = vector.load %arg7[%c24_54, %c64_55] : memref<32x128xf32, #tpu.memory_space<vmem>>, vector<8x64xf32>
    tpu.vector_store %arg7[%c24_54, %c64_55], %172 {strides = array<i32>} : memref<32x128xf32, #tpu.memory_space<vmem>>, vector<8x64xf32>,
    %c0_56 = arith.constant 0 : index
    %c0_57 = arith.constant 0 : index
    %c0_58 = arith.constant 0 : index
    %174 = vector.load %arg4[%c0_56, %c0_57, %c0_58] : memref<3x32x32xbf16, #tpu.memory_space<vmem>>, vector<1x32x32xbf16>
    %175 = vector.shape_cast %174 : vector<1x32x32xbf16> to vector<32x32xbf16>
    %c0_59 = arith.constant 0 : index
    %c0_60 = arith.constant 0 : index
    %176 = vector.load %arg7[%c0_59, %c0_60] : memref<32x128xf32, #tpu.memory_space<vmem>>, vector<32x128xf32>
    %177 = arith.truncf %176 : vector<32x128xf32> to vector<32x128xbf16>
    %cst_61 = arith.constant dense<0.000000e+00> : vector<32x128xf32>
    %178 = tpu.matmul %175, %177, %cst_61 {dimension_numbers = #tpu.dot_dimension_numbers<[1], [0], [0], [1], [0, 0, 1, 1], [], []>} : vector<32x32xbf16>, vector<32x128xbf16>, vector<32x128xf32> -> vector<32x128xf32>
    %179 = vector.broadcast %4 : vector<32x1xf32> to vector<32x128xf32>
    %180 = arith.addf %178, %179 : vector<32x128xf32>
    %181 = arith.addf %180, %0 : vector<32x128xf32>
    %cst_62 = arith.constant dense<0.000000e+00> : vector<128xf32>
    %182 = vector.multi_reduction <add>, %181, %cst_62 [0] : vector<32x128xf32> to vector<128xf32>
    %183 = vector.shape_cast %182 : vector<128xf32> to vector<1x128xf32>
    %cst_63 = arith.constant 3.200000e+01 : f32
    %184 = vector.broadcast %cst_63 : f32 to vector<1x128xf32>
    %185 = arith.divf %183, %184 : vector<1x128xf32>
    %186 = vector.broadcast %185 : vector<1x128xf32> to vector<32x128xf32>
    %187 = arith.subf %181, %186 : vector<32x128xf32>
    %188 = arith.mulf %187, %187 : vector<32x128xf32>
    %cst_64 = arith.constant dense<0.000000e+00> : vector<128xf32>
    %189 = vector.multi_reduction <add>, %188, %cst_64 [0] : vector<32x128xf32> to vector<128xf32>
    %190 = vector.shape_cast %189 : vector<128xf32> to vector<1x128xf32>
    %cst_65 = arith.constant 3.200000e+01 : f32
    %191 = vector.broadcast %cst_65 : f32 to vector<1x128xf32>
    %192 = arith.divf %190, %191 : vector<1x128xf32>
    %193 = vector.broadcast %185 : vector<1x128xf32> to vector<32x128xf32>
    %194 = arith.subf %181, %193 : vector<32x128xf32>
    %cst_66 = arith.constant 9.99999974E-6 : f32
    %195 = vector.broadcast %cst_66 : f32 to vector<1x128xf32>
    %196 = arith.addf %192, %195 : vector<1x128xf32>
    %197 = math.rsqrt %196 : vector<1x128xf32>
    %198 = vector.broadcast %197 : vector<1x128xf32> to vector<32x128xf32>
    %199 = arith.mulf %194, %198 : vector<32x128xf32>
    %200 = vector.broadcast %5 : vector<32x1xf32> to vector<32x128xf32>
    %201 = arith.mulf %199, %200 : vector<32x128xf32>
    %202 = vector.broadcast %6 : vector<32x1xf32> to vector<32x128xf32>
    %203 = arith.addf %201, %202 : vector<32x128xf32>
    %c1 = arith.constant 1 : index
    %c0_67 = arith.constant 0 : index
    %c0_68 = arith.constant 0 : index
    %204 = vector.load %arg4[%c1, %c0_67, %c0_68] : memref<3x32x32xbf16, #tpu.memory_space<vmem>>, vector<1x32x32xbf16>
    %205 = vector.shape_cast %204 : vector<1x32x32xbf16> to vector<32x32xbf16>
    %206 = arith.truncf %203 : vector<32x128xf32> to vector<32x128xbf16>
    %cst_69 = arith.constant dense<0.000000e+00> : vector<32x128xf32>
    %207 = tpu.matmul %205, %206, %cst_69 {dimension_numbers = #tpu.dot_dimension_numbers<[1], [0], [0], [1], [0, 0, 1, 1], [], []>} : vector<32x32xbf16>, vector<32x128xbf16>, vector<32x128xf32> -> vector<32x128xf32>
    %208 = vector.broadcast %7 : vector<32x1xf32> to vector<32x128xf32>
    %209 = arith.addf %207, %208 : vector<32x128xf32>
    %cst_70 = arith.constant 5.000000e-01 : f32
    %210 = vector.broadcast %cst_70 : f32 to vector<32x128xf32>
    %211 = arith.mulf %210, %209 : vector<32x128xf32>
    %cst_71 = arith.constant 0.707106769 : f32
    %212 = vector.broadcast %cst_71 : f32 to vector<32x128xf32>
    %213 = arith.mulf %209, %212 : vector<32x128xf32>
    %214 = math.erf %213 : vector<32x128xf32>
    %cst_72 = arith.constant 1.000000e+00 : f32
    %215 = vector.broadcast %cst_72 : f32 to vector<32x128xf32>
    %216 = arith.addf %215, %214 : vector<32x128xf32>
    %217 = arith.mulf %211, %216 : vector<32x128xf32>
    %c2 = arith.constant 2 : index
    %c0_73 = arith.constant 0 : index
    %c0_74 = arith.constant 0 : index
    %218 = vector.load %arg4[%c2, %c0_73, %c0_74] : memref<3x32x32xbf16, #tpu.memory_space<vmem>>, vector<1x32x32xbf16>
    %219 = vector.shape_cast %218 : vector<1x32x32xbf16> to vector<32x32xbf16>
    %220 = arith.truncf %217 : vector<32x128xf32> to vector<32x128xbf16>
    %cst_75 = arith.constant dense<0.000000e+00> : vector<32x128xf32>
    %221 = tpu.matmul %219, %220, %cst_75 {dimension_numbers = #tpu.dot_dimension_numbers<[1], [0], [0], [1], [0, 0, 1, 1], [], []>} : vector<32x32xbf16>, vector<32x128xbf16>, vector<32x128xf32> -> vector<32x128xf32>
    %222 = vector.broadcast %8 : vector<32x1xf32> to vector<32x128xf32>
    %223 = arith.addf %221, %222 : vector<32x128xf32>
    %224 = arith.addf %223, %181 : vector<32x128xf32>
    %c0_76 = arith.constant 0 : index
    %c0_77 = arith.constant 0 : index
    %225 = vector.load %arg6[%c0_76, %c0_77] : memref<32x128xf32, #tpu.memory_space<vmem>>, vector<32x128xf32>
    tpu.vector_store %arg6[%c0_76, %c0_77], %224 {strides = array<i32>} : memref<32x128xf32, #tpu.memory_space<vmem>>, vector<32x128xf32>,
    return
  }
  func.func @transform_0(%arg0: i32) -> (i32, i32) {
    %c0_i32 = arith.constant 0 : i32
    %c0_i32_0 = arith.constant 0 : i32
    return %c0_i32, %arg0 : i32, i32
  }
  func.func @transform_1(%arg0: i32) -> (i32, i32) {
    %c0_i32 = arith.constant 0 : i32
    %c0_i32_0 = arith.constant 0 : i32
    %c0_i32_1 = arith.constant 0 : i32
    return %c0_i32, %c0_i32_0 : i32, i32
  }
  func.func @transform_2(%arg0: i32) -> (i32, i32) {
    %c0_i32 = arith.constant 0 : i32
    %c0_i32_0 = arith.constant 0 : i32
    %c0_i32_1 = arith.constant 0 : i32
    return %c0_i32, %c0_i32_0 : i32, i32
  }
  func.func @transform_3(%arg0: i32) -> (i32, i32, i32) {
    %c0_i32 = arith.constant 0 : i32
    %c0_i32_0 = arith.constant 0 : i32
    %c0_i32_1 = arith.constant 0 : i32
    %c0_i32_2 = arith.constant 0 : i32
    return %c0_i32, %c0_i32_0, %c0_i32_1 : i32, i32, i32
  }
  func.func @transform_4(%arg0: i32) -> (i32, i32) {
    %c0_i32 = arith.constant 0 : i32
    %c0_i32_0 = arith.constant 0 : i32
    %c0_i32_1 = arith.constant 0 : i32
    return %c0_i32, %c0_i32_0 : i32, i32
  }
  func.func @transform_5(%arg0: i32) -> (i32, i32) {
    %c0_i32 = arith.constant 0 : i32
    %c0_i32_0 = arith.constant 0 : i32
    return %c0_i32, %arg0 : i32, i32
  }
}

</mosaic_0001>

<bundles_post_ra>
// kernel: self_attention_block.1
= control target key start
LH: loop header
LB: loop body
LE: loop exit
PB: predicated region body
PF: predicated region fallthrough
CT: control target
= control target key end

     0   :  { %v3122_v0 = vmov 1   ;;  %v3123_v1 = vmov 0   ;;  %vm224_vm0 = vcmask 261120   ;;  %vm359_vm1 = vcmask 1043456   ;;  %s3739_s4 = inlined_call_operand.vmem [shape: f32[32,7], index: 4, kind: input, shape index: {}]   ;;  %s3740_s0 = inlined_call_operand.vmem [shape: f32[32,128], index: 0, kind: input, shape index: {}]   ;;  %s3741_s1 = inlined_call_operand.vmem [shape: bf16[96,32], index: 1, kind: input, shape index: {}]   ;;  %s3742_s2 = inlined_call_operand.vmem [shape: f32[96,1], index: 2, kind: input, shape index: {}]   ;;  %s3743_s3 = inlined_call_operand.vmem [shape: bf16[3,32,32], index: 3, kind: input, shape index: {}]   ;;  %s3744_s5 = inlined_call_operand.vmem [shape: f32[32,128], index: 5, kind: output, shape index: {}]  }
   0x1   :  { %2928 = vset.pattern.permute.xlu1 %v3122_v0  ;;  %2927 = vset.pattern.permute.xlu0 %v3123_v1  ;;  %v27_v2 = vld [vmem:[%s3739_s4 + $0x10] sm:$0xff]  ;;  %v28_v3 = vld [vmem:[%s3739_s4 + $0x18] sm:$0xff]  ;;  %v25_v4 = vld [vmem:[%s3739_s4] sm:$0xff]  ;;  %vm346_vm2 = vcmask 64512   ;;  %vm3126_vm3 = vmmov 0   ;;  %vm428_vm4 = vcmask 523264  }
   0x2   :  { %97 = vperm.xlu1 %2928, %v27_v2   ;;  %76 = vperm.xlu0 %2927, %v27_v2   ;;  %v26_v5 = vld [vmem:[%s3739_s4 + $0x8] sm:$0xff]  ;;  %v21_v6 = vld [vmem:[%s3740_s0] sm:$0xff]  ;;  %v23_v8 = vld [vmem:[%s3740_s0 + $0x10] sm:$0xff]  ;;  %vm1452_vm5 = vcmask 1048064  }
   0x3   :  { %v22_v7 = vld [vmem:[%s3740_s0 + $0x8] sm:$0xff]  ;;  %v2946_v10 = vld [vmem:[%s3741_s1] sm:$0xff]   ;;  %v24_v12 = vld [vmem:[%s3740_s0 + $0x18] sm:$0xff] }
   0x4   :  { %v29_v9 = vadd.f32 %v22_v7, %v21_v6  ;;  %2697 = vmatprep.mubr.msk.bf16.mxu0 %vm224_vm0, %v2946_v10  ;;  %v126_v17 = vld [vmem:[%s3742_s2 + $0x20] sm:$0xff]  ;;  %v127_v18 = vld [vmem:[%s3742_s2 + $0x28] sm:$0xff] }
   0x5   :  { %v122_v19 = vld [vmem:[%s3742_s2] sm:$0xff]  ;;  %v123_v21 = vld [vmem:[%s3742_s2 + $0x8] sm:$0xff] }
   0x6   :  { %101 = vperm.xlu1 %2928, %v28_v3   ;;  %81 = vperm.xlu0 %2927, %v28_v3   ;;  %v30_v11 = vadd.f32 %v29_v9, %v23_v8  ;;  %v130_v23 = vld [vmem:[%s3742_s2 + $0x40] sm:$0xff]  ;;  %v131_v25 = vld [vmem:[%s3742_s2 + $0x48] sm:$0xff] }
   0x7   :  { %v2951_v9 = vld [vmem:[%s3741_s1 + $0x28] sm:$0xff]  }
   0x8   :  { %v31_v13 = vadd.f32 %v30_v11, %v24_v12 }
   0xa   :  { %2929 = vset.pattern.permute.xlu1 %v3123_v1  ;;  %66 = vperm.xlu0 %2927, %v25_v4   ;;  %v32_v14 = vrot.slane %v31_v13, 4 }
   0xb   :  { %71 = vperm.xlu1 %2929, %v26_v5  }
   0xc   :  { %v33_v15 = vadd.f32 %v32_v14, %v31_v13 }
   0xe   :  { %2930 = vset.pattern.permute.xlu0 %v3122_v0  ;;  %v34_v16 = vrot.slane %v33_v15, 2 }
   0xf   :  { %2931 = vset.pattern.permute.xlu1 %v3122_v0  ;;  %89 = vperm.xlu0 %2930, %v25_v4  }
  0x10   :  { %93 = vperm.xlu1 %2931, %v26_v5   ;;  %v35_v20 = vadd.f32 %v34_v16, %v33_v15  ;;  %v2947_v5 = vld [vmem:[%s3741_s1 + $0x8] sm:$0xff]  }
  0x12   :  { %v36_v22 = vrot.slane %v35_v20, 1 }
  0x13   :  { %2933 = vset.pattern.permute.xlu0 %v3123_v1 }
  0x14   :  { %2932 = vset.pattern.permute.xlu1 %v3123_v1  ;;  %161 = vperm.xlu0 %2933, %v127_v18   ;;  %v37_v24 = vadd.f32 %v36_v22, %v35_v20 }
  0x15   :  { %156 = vperm.xlu1 %2932, %v126_v17  }
  0x16   :  { %v39_v26 = vmul.f32 0.03125, %v37_v24 }
  0x18   :  { %v40_v27 = vsub.f32 %v21_v6, %v39_v26  ;;  %v41_v28 = vsub.f32 %v22_v7, %v39_v26  ;;  %v42_v29 = vsub.f32 %v23_v8, %v39_v26  ;;  %v43_v32 = vsub.f32 %v24_v12, %v39_v26  ;;  %v2948_v6 = vld [vmem:[%s3741_s1 + $0x10] sm:$0xff]   ;;  %v2949_v7 = vld [vmem:[%s3741_s1 + $0x18] sm:$0xff]   ;;  %v2950_v8 = vld [vmem:[%s3741_s1 + $0x20] sm:$0xff]  }
  0x19   :  { %136 = vperm.xlu1 %2932, %v122_v19  }
  0x1a   :  { %v44_v30 = vmul.f32 %v40_v27, %v40_v27  ;;  %v45_v31 = vmul.f32 %v41_v28, %v41_v28  ;;  %v46_v33 = vmul.f32 %v42_v29, %v42_v29  ;;  %v47_v35 = vmul.f32 %v43_v32, %v43_v32 }
  0x1c   :  { %v48_v34 = vadd.f32 %v45_v31, %v44_v30  ;;  %v129_v30 = vld [vmem:[%s3742_s2 + $0x38] sm:$0xff]  ;;  %v128_v31 = vld [vmem:[%s3742_s2 + $0x30] sm:$0xff] }
  0x1d   :  { %141 = vperm.xlu1 %2932, %v123_v21  }
  0x1e   :  { %v49_v36 = vadd.f32 %v48_v34, %v46_v33  ;;  %v124_v33 = vld [vmem:[%s3742_s2 + $0x10] sm:$0xff]  ;;  %v133_v34 = vld [vmem:[%s3742_s2 + $0x58] sm:$0xff] }
  0x20   :  { %v50_v37 = vadd.f32 %v49_v36, %v47_v35  ;;  %v125_v35 = vld [vmem:[%s3742_s2 + $0x18] sm:$0xff] }
  0x21   :  { %176 = vperm.xlu1 %2932, %v130_v23  }
  0x22   :  { %v51_v38 = vrot.slane %v50_v37, 4 }
  0x24   :  { %v52_v39 = vadd.f32 %v51_v38, %v50_v37 }
  0x25   :  { %181 = vperm.xlu1 %2932, %v131_v25  }
  0x26   :  { %v53_v40 = vrot.slane %v52_v39, 2 }
  0x28   :  { %v54_v41 = vadd.f32 %v53_v40, %v52_v39 }
  0x2a   :  { %v55_v42 = vrot.slane %v54_v41, 1 }
  0x2c   :  { %v56_v43 = vadd.f32 %v55_v42, %v54_v41 }
  0x2e   :  { %v57_v44 = vmul.f32 0.03125, %v56_v43 }
  0x30   :  { %v58_v45 = vadd.f32 1e-05, %v57_v44 }
  0x32   :  { %2958 = vrsqrt.f32 %v58_v45 }
  0x3f   :  { %v2959_v46 = vpop.eup %2958 }
  0x40   :  { %v62_v47 = vmul.f32 %v2959_v46, %v42_v29  ;;  %v63_v50 = vmul.f32 %v2959_v46, %v43_v32  ;;  %v60_v58 = vmul.f32 %v2959_v46, %v40_v27  ;;  %v61_v60 = vmul.f32 %v2959_v46, %v41_v28  ;;  %v132_v32 = vld [vmem:[%s3742_s2 + $0x50] sm:$0xff]  ;;  %s3124_s2 = smov 64  }
  0x7d   :  { %v98_v48 = vpop.permute.xlu1 %97  ;;  %v77_v49 = vpop.permute.xlu0 %76 }
  0x7e   :  { %v86_v51 = vmul.f32 %v77_v49, %v62_v47 }
  0x80   :  { %v106_v55 = vadd.f32 %v98_v48, %v86_v51 }
  0x81   :  { %v102_v52 = vpop.permute.xlu1 %101  ;;  %v82_v53 = vpop.permute.xlu0 %81 }
  0x82   :  { %v87_v54 = vmul.f32 %v82_v53, %v63_v50 }
  0x84   :  { %v107_v56 = vadd.f32 %v102_v52, %v87_v54 }
  0x85   :  { %v67_v57 = vpop.permute.xlu0 %66 }
  0x86   :  { %v72_v59 = vpop.permute.xlu1 %71  ;;  %v121_v61 = vpack.c.bf16 %v107_v56, %v106_v55  ;;  %v84_v62 = vmul.f32 %v67_v57, %v60_v58 }
  0x87   :  { %v85_v63 = vmul.f32 %v72_v59, %v61_v60 }
  0x88   :  { %2693 = vmatprep.subr.bf16.mxu0 %v121_v61 }
  0x89   :  { %2694 = vmatpush3.bf16.msra.mxu0 %v121_v61  ;;  %v3125_v61 = vmov 0.0  }
  0x8a   :  { %v90_v0 = vpop.permute.xlu0 %89 }
  0x8b   :  { %v104_v1 = vadd.f32 %v90_v0, %v84_v62  ;;  %v94_v2 = vpop.permute.xlu1 %93 }
  0x8c   :  { %v105_v3 = vadd.f32 %v94_v2, %v85_v63 }
  0x8e   :  { %v120_v4 = vpack.c.bf16 %v105_v3, %v104_v1 }
  0x8f   :  { %v162_v24 = vpop.permute.xlu0 %161 }
  0x90   :  { %2695 = vmatprep.subr.bf16.mxu0 %v120_v4  ;;  %v157_v10 = vpop.permute.xlu1 %156 }
  0x91   :  { %2696 = vmatpush3.bf16.msra.mxu0 %v120_v4 }
  0x92   :  { %2741 = vmatprep.subr.bf16.mxu0 %v3125_v61 }
  0x94   :  { %2698 = vmatmul.mubr.msk.bf16.vlgmr.msra.gmra.mxu0 %vm224_vm0, %v2947_v5  ;;  %v137_v11 = vpop.permute.xlu1 %136 }
  0x95   :  { %2701 = vmatprep.mubr.msk.bf16.mxu0 %vm224_vm0, %v2948_v6 }
  0x98   :  { %v142_v15 = vpop.permute.xlu1 %141 }
  0x9c   :  { %2702 = vmatmul.mubr.msk.bf16.gmra.mxu0 %vm224_vm0, %v2949_v7  ;;  %v177_v39 = vpop.permute.xlu1 %176 }
  0x9d   :  { %2705 = vmatprep.mubr.msk.bf16.mxu0 %vm224_vm0, %v2950_v8 }
  0xa0   :  { %v182_v41 = vpop.permute.xlu1 %181 }
  0xa4   :  { %2706 = vmatmul.mubr.msk.bf16.gmra.mxu0 %vm224_vm0, %v2951_v9 }
  0xa5   :  { %2749 = vmatprep.mubr.msk.bf16.mxu0 %vm3126_vm3, %v3125_v61 }
 0x154   :  { %v3228_v12 = vpop.f32.mrf.mxu0 }
 0x156   :  { %v277_v13 = vpop.f32.mrf.mxu0 }
 0x157   :  { %v278_v17 = vadd.f32 %v277_v13, %v137_v11 }
 0x158   :  { %v3230_v14 = vpop.f32.mrf.mxu0 }
 0x15a   :  { %v280_v16 = vpop.f32.mrf.mxu0 }
 0x15b   :  { %v281_v18 = vadd.f32 %v280_v16, %v142_v15 }
 0x15c   :  { %v2703_v19 = vpop.f32.mrf.mxu0 }
 0x15d   :  { %v324_v20 = vpack.c.bf16 %v281_v18, %v278_v17 }
 0x15e   :  { %v293_v21 = vpop.f32.mrf.mxu0 }
 0x15f   :  { %2909 = vmatprep.subr.msk.bf16.mxu1 %vm359_vm1, %v324_v20  ;;  %v361_v22 = vsel %vm359_vm1, %v324_v20, 0  ;;  %v294_v26 = vadd.f32 %v293_v21, %v157_v10  ;;  %v3281_v59 = vrot.slane %v324_v20, 4 }
 0x160   :  { %v2704_v23 = vpop.f32.mrf.mxu0  ;;  %2710 = vmatpush3.bf16.msra.mxu1 %v361_v22 }
 0x161   :  { %2719 = vmatprep.subr.bf16.mxu1 %v3125_v61 }
 0x162   :  { %v296_v25 = vpop.f32.mrf.mxu0 }
 0x163   :  { %v297_v27 = vadd.f32 %v296_v25, %v162_v24 }
 0x164   :  { %v3270_v52 = vpop.f32.mrf.mxu0 }
 0x165   :  { %v326_v28 = vpack.c.bf16 %v297_v27, %v294_v26 }
 0x166   :  { %v309_v53 = vpop.f32.mrf.mxu0 }
 0x167   :  { %330 = vxpose.xlu0.c.b16.start.end [1/1] (short) (narrow) %v326_v28, 64  ;;  %v553_v29 = vrot.slane %v326_v28, 4  ;;  %v310_v57 = vadd.f32 %v309_v53, %v177_v39 }
 0x168   :  { %v3272_v54 = vpop.f32.mrf.mxu0 }
 0x169   :  { %555 = vxpose.xlu1.c.b16.start.end [1/1] (short) (narrow) %v553_v29, 64 }
 0x16a   :  { %v312_v55 = vpop.f32.mrf.mxu0 }
 0x16b   :  { %v313_v56 = vadd.f32 %v312_v55, %v182_v41 }
 0x16d   :  { %v3277_v58 = vpack.c.bf16 %v313_v56, %v310_v57 }
 0x16f   :  { %v733_v22 = vrot.slane %v3277_v58, 4 }
 0x179   :  { %171 = vperm.xlu1 %2932, %v129_v30  }
 0x17c   :  { %166 = vperm.xlu0 %2933, %v128_v31  }
 0x17d   :  { %186 = vperm.xlu1 %2932, %v132_v32  }
 0x180   :  { %146 = vperm.xlu0 %2933, %v124_v33  }
 0x181   :  { %191 = vperm.xlu1 %2932, %v133_v34  }
 0x184   :  { %151 = vperm.xlu0 %2933, %v125_v35  }
 0x1c9   :  { %v338_v36 = vpop.trf.xlu0 }
 0x1ca   :  { %2711 = vmatprep.mubr.msk.bf16.mxu1 %vm346_vm2, %v338_v36 }
 0x1cb   :  { %v3256_v42 = vpop.trf.xlu1 }
 0x1cd   :  { %v339_v37 = vpop.trf.xlu0 }
 0x1ce   :  { %2712 = vmatmul.mubr.msk.bf16.vlgmr.msra.gmra.mxu1 %vm346_vm2, %v339_v37 }
 0x1cf   :  { %v3258_v43 = vpop.trf.xlu1 }
 0x1d1   :  { %v340_v38 = vpop.trf.xlu0 }
 0x1d2   :  { %2715 = vmatprep.mubr.msk.bf16.mxu1 %vm346_vm2, %v340_v38 }
 0x1d3   :  { %v3260_v44 = vpop.trf.xlu1 }
 0x1d5   :  { %v341_v40 = vpop.trf.xlu0 }
 0x1d6   :  { %2716 = vmatmul.mubr.msk.bf16.gmra.mxu1 %vm346_vm2, %v341_v40 }
 0x1d7   :  { %v3262_v45 = vpop.trf.xlu1  ;;  %2727 = vmatprep.mubr.msk.bf16.mxu1 %vm3126_vm3, %v3125_v61 }
 0x1f4   :  { %v172_v46 = vpop.permute.xlu1 %171 }
 0x1f5   :  { %v305_v48 = vadd.f32 %v2704_v23, %v172_v46 }
 0x1f7   :  { %v167_v47 = vpop.permute.xlu0 %166 }
 0x1f8   :  { %v302_v49 = vadd.f32 %v2703_v19, %v167_v47  ;;  %v187_v60 = vpop.permute.xlu1 %186 }
 0x1f9   :  { %v318_v41 = vadd.f32 %v3270_v52, %v187_v60 }
 0x1fa   :  { %v3264_v50 = vpack.c.bf16 %v305_v48, %v302_v49 }
 0x1fb   :  { %v147_v62 = vpop.permute.xlu0 %146 }
 0x1fc   :  { %v998_v51 = vrot.slane %v3264_v50, 4  ;;  %778 = vxpose.xlu0.c.b16.start.end [1/1] (short) (narrow) %v3264_v50, 64  ;;  %v192_v63 = vpop.permute.xlu1 %191  ;;  %v286_v27 = vadd.f32 %v3228_v12, %v147_v62 }
 0x1fd   :  { %v321_v39 = vadd.f32 %v3272_v54, %v192_v63 }
 0x1fe   :  { %1000 = vxpose.xlu1.c.b16.start.end [1/1] (short) (narrow) %v998_v51, 64 }
 0x1ff   :  { %v152_v0 = vpop.permute.xlu0 %151  ;;  %v3334_v47 = vpack.c.bf16 %v321_v39, %v318_v41 }
 0x201   :  { %v1178_v54 = vrot.slane %v3334_v47, 4 }
 0x20e   :  { %1242 = vrot.lane.b32.xlu1 %v324_v20, %s3124_s2  ;;  %v289_v20 = vadd.f32 %v3230_v14, %v152_v0 }
 0x210   :  { %v3325_v36 = vpack.c.bf16 %v289_v20, %v286_v27 }
 0x211   :  { %1223 = vrot.lane.b32.xlu0 %v326_v28, %s3124_s2 }
 0x212   :  { %1454 = vrot.lane.b32.xlu1 %v553_v29, %s3124_s2  ;;  %v3339_v53 = vrot.slane %v3325_v36, 4 }
 0x216   :  { %1403 = vrot.lane.b32.xlu1 %v3277_v58, %s3124_s2 }
 0x21a   :  { %1473 = vrot.lane.b32.xlu1 %v3281_v59, %s3124_s2 }
 0x25e   :  { %v3289_v2 = vpop.trf.xlu0 }
 0x260   :  { %v3287_v1 = vpop.trf.xlu1 }
 0x262   :  { %v3293_v4 = vpop.trf.xlu0 }
 0x264   :  { %v3291_v3 = vpop.trf.xlu1 }
 0x266   :  { %v3297_v6 = vpop.trf.xlu0 }
 0x268   :  { %v3295_v5 = vpop.trf.xlu1 }
 0x26a   :  { %v3301_v8 = vpop.trf.xlu0 }
 0x26c   :  { %v3299_v7 = vpop.trf.xlu1 }
 0x280   :  { %v3307_v9 = vpop.permute.xlu1 %1242 }
 0x283   :  { %v1224_v10 = vpop.permute.xlu0 %1223 }
 0x284   :  { %1226 = vxpose.xlu0.c.b16.start.end [1/1] (short) (narrow) %v1224_v10, 64  ;;  %v1455_v11 = vpop.permute.xlu1 %1454 }
 0x285   :  { %1457 = vxpose.xlu1.c.b16.start.end [1/1] (short) (narrow) %v1455_v11, 64 }
 0x28e   :  { %v2713_v13 = vpop.f32.mrf.mxu1 }
 0x28f   :  { %v431_v30 = vsel %vm428_vm4, %v2713_v13, -inf }
 0x290   :  { %v397_v15 = vpop.f32.mrf.mxu1 }
 0x291   :  { %v429_v14 = vsel %vm428_vm4, %v397_v15, -inf }
 0x292   :  { %v2714_v16 = vpop.f32.mrf.mxu1 }
 0x293   :  { %v432_v23 = vsel %vm428_vm4, %v2714_v16, -inf }
 0x294   :  { %v400_v17 = vpop.f32.mrf.mxu1 }
 0x295   :  { %v430_v31 = vsel %vm428_vm4, %v400_v17, -inf }
 0x296   :  { %v2717_v18 = vpop.f32.mrf.mxu1 }
 0x297   :  { %v437_v24 = vsel %vm428_vm4, %v2717_v18, -inf }
 0x298   :  { %v413_v19 = vpop.f32.mrf.mxu1  ;;  %v438_v33 = vmax.f32 %v431_v30, %v437_v24 }
 0x299   :  { %1684 = vrot.lane.b32.xlu0 %v3264_v50, %s3124_s2  ;;  %v433_v25 = vsel %vm428_vm4, %v413_v19, -inf }
 0x29a   :  { %v2718_v21 = vpop.f32.mrf.mxu1  ;;  %v434_v34 = vmax.f32 %v429_v14, %v433_v25 }
 0x29b   :  { %v439_v26 = vsel %vm428_vm4, %v2718_v21, -inf }
 0x29c   :  { %v440_v28 = vmax.f32 %v432_v23, %v439_v26  ;;  %v416_v29 = vpop.f32.mrf.mxu1 }
 0x29d   :  { %v435_v32 = vsel %vm428_vm4, %v416_v29, -inf  ;;  %1634 = vrot.lane.b32.xlu0 %v733_v22, %s3124_s2 }
 0x29e   :  { %v436_v35 = vmax.f32 %v430_v31, %v435_v32  ;;  %v442_v12 = vmax.f32 %v438_v33, %v440_v28 }
 0x2a0   :  { %v441_v37 = vmax.f32 %v434_v34, %v436_v35 }
 0x2a1   :  { %1703 = vrot.lane.b32.xlu0 %v3325_v36, %s3124_s2 }
 0x2a2   :  { %v443_v38 = vmax.f32 %v441_v37, %v442_v12 }
 0x2a4   :  { %v444_v40 = vrot.slane %v443_v38, 4 }
 0x2a5   :  { %1914 = vrot.lane.b32.xlu0 %v998_v51, %s3124_s2 }
 0x2a6   :  { %v445_v46 = vmax.f32 %v443_v38, %v444_v40 }
 0x2a8   :  { %v446_v48 = vrot.slane %v445_v46, 2 }
 0x2a9   :  { %1864 = vrot.lane.b32.xlu0 %v3334_v47, %s3124_s2 }
 0x2aa   :  { %v447_v49 = vmax.f32 %v445_v46, %v446_v48 }
 0x2ac   :  { %v448_v55 = vrot.slane %v447_v49, 1 }
 0x2ad   :  { %1933 = vrot.lane.b32.xlu0 %v3339_v53, %s3124_s2 }
 0x2ae   :  { %v449_v52 = vmax.f32 %v447_v49, %v448_v55 }
 0x2b0   :  { %v450_v50 = vsub.f32 %v397_v15, %v449_v52  ;;  %v451_v51 = vsub.f32 %v400_v17, %v449_v52  ;;  %v452_v56 = vsub.f32 %v2713_v13, %v449_v52  ;;  %v453_v57 = vsub.f32 %v2714_v16, %v449_v52 }
 0x2b1   :  { %v454_v60 = vsub.f32 %v413_v19, %v449_v52  ;;  %2094 = vrot.lane.b32.xlu0 %v1178_v54, %s3124_s2  ;;  %v455_v10 = vsub.f32 %v416_v29, %v449_v52  ;;  %v456_v20 = vsub.f32 %v2717_v18, %v449_v52  ;;  %v457_v24 = vsub.f32 %v2718_v21, %v449_v52 }
 0x2b2   :  { %v458_v62 = vmul.f32 1.442695, %v450_v50  ;;  %v460_v63 = vmul.f32 1.442695, %v451_v51  ;;  %v462_v0 = vmul.f32 1.442695, %v452_v56 }
 0x2b3   :  { %v464_v11 = vmul.f32 1.442695, %v453_v57  ;;  %v466_v23 = vmul.f32 1.442695, %v454_v60  ;;  %v468_v15 = vmul.f32 1.442695, %v455_v10 }
 0x2b4   :  { %2960 = vpow2.f32 %v458_v62  ;;  %v470_v13 = vmul.f32 1.442695, %v456_v20  ;;  %v472_v16 = vmul.f32 1.442695, %v457_v24 }
 0x2b5   :  { %2962 = vpow2.f32 %v460_v63 }
 0x2b6   :  { %2964 = vpow2.f32 %v462_v0 }
 0x2b7   :  { %2966 = vpow2.f32 %v464_v11 }
 0x2b8   :  { %2968 = vpow2.f32 %v466_v23 }
 0x2b9   :  { %2970 = vpow2.f32 %v468_v15 }
 0x2ba   :  { %2972 = vpow2.f32 %v470_v13 }
 0x2bb   :  { %2974 = vpow2.f32 %v472_v16 }
 0x2c1   :  { %v2961_v17 = vpop.eup %2960 }
 0x2c2   :  { %v2963_v19 = vpop.eup %2962  ;;  %v474_v25 = vsel %vm428_vm4, %v2961_v17, 0.0 }
 0x2c3   :  { %v2965_v26 = vpop.eup %2964  ;;  %v475_v27 = vsel %vm428_vm4, %v2963_v19, 0.0 }
 0x2c4   :  { %v2967_v18 = vpop.eup %2966  ;;  %v476_v28 = vadd.f32 %v475_v27, %v474_v25  ;;  %v477_v29 = vsel %vm428_vm4, %v2965_v26, 0.0 }
 0x2c5   :  { %v2969_v21 = vpop.eup %2968  ;;  %v479_v14 = vsel %vm428_vm4, %v2967_v18, 0.0 }
 0x2c6   :  { %v478_v30 = vadd.f32 %v477_v29, %v476_v28  ;;  %v2971_v31 = vpop.eup %2970  ;;  %v481_v33 = vsel %vm428_vm4, %v2969_v21, 0.0 }
 0x2c7   :  { %v2973_v34 = vpop.eup %2972  ;;  %v483_v12 = vsel %vm428_vm4, %v2971_v31, 0.0 }
 0x2c8   :  { %v480_v32 = vadd.f32 %v479_v14, %v478_v30  ;;  %v2975_v37 = vpop.eup %2974  ;;  %v485_v39 = vsel %vm428_vm4, %v2973_v34, 0.0 }
 0x2c9   :  { %v487_v41 = vsel %vm428_vm4, %v2975_v37, 0.0 }
 0x2ca   :  { %v482_v35 = vadd.f32 %v481_v33, %v480_v32 }
 0x2cc   :  { %v484_v38 = vadd.f32 %v483_v12, %v482_v35 }
 0x2ce   :  { %v486_v40 = vadd.f32 %v485_v39, %v484_v38 }
 0x2d0   :  { %v488_v46 = vadd.f32 %v487_v41, %v486_v40 }
 0x2d2   :  { %v489_v48 = vrot.slane %v488_v46, 4 }
 0x2d4   :  { %v490_v49 = vadd.f32 %v489_v48, %v488_v46 }
 0x2d6   :  { %v491_v55 = vrot.slane %v490_v49, 2 }
 0x2d8   :  { %v492_v52 = vadd.f32 %v491_v55, %v490_v49 }
 0x2da   :  { %v493_v50 = vrot.slane %v492_v52, 1 }
 0x2dc   :  { %v494_v51 = vadd.f32 %v493_v50, %v492_v52 }
 0x2de   :  { %2976 = vrcp.f32 %v494_v51 }
 0x2e6   :  { %v3356_v13 = vpop.trf.xlu0 }
 0x2eb   :  { %v2977_v56 = vpop.eup %2976 }
 0x2ec   :  { %v502_v57 = vmul.f32 %v2977_v56, %v2973_v34  ;;  %v503_v60 = vmul.f32 %v2977_v56, %v2975_v37  ;;  %v496_v62 = vmul.f32 %v2977_v56, %v2961_v17  ;;  %v497_v63 = vmul.f32 %v2977_v56, %v2963_v19  ;;  %v3360_v17 = vpop.trf.xlu0 }
 0x2ed   :  { %v500_v10 = vmul.f32 %v2977_v56, %v2969_v21  ;;  %v501_v11 = vmul.f32 %v2977_v56, %v2971_v31  ;;  %v498_v24 = vmul.f32 %v2977_v56, %v2965_v26  ;;  %v499_v15 = vmul.f32 %v2977_v56, %v2967_v18 }
 0x2ee   :  { %v507_v0 = vpack.c.bf16 %v503_v60, %v502_v57  ;;  %v504_v20 = vpack.c.bf16 %v497_v63, %v496_v62  ;;  %v586_v19 = vsel %vm359_vm1, %v3281_v59, 0 }
 0x2ef   :  { %v506_v23 = vpack.c.bf16 %v501_v11, %v500_v10  ;;  %v505_v16 = vpack.c.bf16 %v499_v15, %v498_v24 }
 0x2f0   :  { %2720 = vmatpush3.bf16.msra.mxu1 %v507_v0  ;;  %v3368_v25 = vpop.trf.xlu0 }
 0x2f1   :  { %2721 = vmatprep.subr.bf16.mxu1 %v3125_v61 }
 0x2f4   :  { %2722 = vmatpush3.bf16.msra.mxu1 %v506_v23  ;;  %v3373_v26 = vpop.trf.xlu0 }
 0x2f5   :  { %2723 = vmatprep.subr.bf16.mxu1 %v3125_v61 }
 0x2f8   :  { %2724 = vmatpush3.bf16.msra.mxu1 %v505_v16 }
 0x2f9   :  { %2725 = vmatprep.subr.bf16.mxu1 %v3125_v61 }
 0x2fc   :  { %2726 = vmatpush3.bf16.msra.mxu1 %v504_v20 }
 0x2fd   :  { %2910 = vmatprep.subr.msk.bf16.mxu1 %vm359_vm1, %v3281_v59 }
 0x2ff   :  { %2728 = vmatmul.mubr.msk.bf16.vlgmr.msra.gmra.mxu1 %vm428_vm4, %v3277_v58 }
 0x300   :  { %2732 = vmatpush3.bf16.msra.mxu1 %v586_v19  ;;  %2733 = vmatprep.mubr.msk.bf16.mxu1 %vm346_vm2, %v3256_v42 }
 0x301   :  { %2763 = vmatprep.subr.bf16.mxu1 %v3125_v61 }
 0x307   :  { %2734 = vmatmul.mubr.msk.bf16.vlgmr.msra.gmra.mxu1 %vm346_vm2, %v3258_v43 }
 0x308   :  { %2737 = vmatprep.mubr.msk.bf16.mxu1 %vm346_vm2, %v3260_v44 }
 0x30b   :  { %v1685_v27 = vpop.permute.xlu0 %1684 }
 0x30c   :  { %1687 = vxpose.xlu1.c.b16.start.end [1/1] (short) (narrow) %v1685_v27, 64 }
 0x30f   :  { %2738 = vmatmul.mubr.msk.bf16.gmra.mxu1 %vm346_vm2, %v3262_v45  ;;  %v3381_v59 = vpop.permute.xlu0 %1634 }
 0x310   :  { %2771 = vmatprep.mubr.msk.bf16.mxu1 %vm3126_vm3, %v3125_v61 }
 0x313   :  { %v3385_v42 = vpop.permute.xlu0 %1703 }
 0x317   :  { %v1915_v18 = vpop.permute.xlu0 %1914 }
 0x319   :  { %1917 = vxpose.xlu1.c.b16.start.end [1/1] (short) (narrow) %v1915_v18, 64 }
 0x3bf   :  { %v545_v28 = vpop.f32.mrf.mxu1 }
 0x3c0   :  { %551 = vst.msk [vmem:[#allocation2] sm:$0xff] %vm428_vm4, %v545_v28 }
 0x3c1   :  { %v2729_v43 = vpop.f32.mrf.mxu1 }
 0x3c3   :  { %v548_v29 = vpop.f32.mrf.mxu1 }
 0x3c5   :  { %v2730_v44 = vpop.f32.mrf.mxu1 }
 0x3c7   :  { %v2735_v21 = vpop.f32.mrf.mxu1 }
 0x3c8   :  { %v655_v40 = vsel %vm428_vm4, %v2735_v21, -inf }
 0x3c9   :  { %v622_v30 = vpop.f32.mrf.mxu1 }
 0x3ca   :  { %v653_v41 = vsel %vm428_vm4, %v622_v30, -inf }
 0x3cb   :  { %v2736_v14 = vpop.f32.mrf.mxu1 }
 0x3cc   :  { %v656_v34 = vsel %vm428_vm4, %v2736_v14, -inf }
 0x3cd   :  { %v625_v31 = vpop.f32.mrf.mxu1 }
 0x3ce   :  { %v654_v46 = vsel %vm428_vm4, %v625_v31, -inf }
 0x3cf   :  { %v2739_v45 = vpop.f32.mrf.mxu1 }
 0x3d0   :  { %v661_v35 = vsel %vm428_vm4, %v2739_v45, -inf }
 0x3d1   :  { %v638_v32 = vpop.f32.mrf.mxu1  ;;  %v662_v49 = vmax.f32 %v655_v40, %v661_v35 }
 0x3d2   :  { %v657_v12 = vsel %vm428_vm4, %v638_v32, -inf }
 0x3d3   :  { %v2740_v33 = vpop.f32.mrf.mxu1  ;;  %v658_v55 = vmax.f32 %v653_v41, %v657_v12 }
 0x3d4   :  { %v663_v37 = vsel %vm428_vm4, %v2740_v33, -inf }
 0x3d5   :  { %v664_v38 = vmax.f32 %v656_v34, %v663_v37  ;;  %v641_v39 = vpop.f32.mrf.mxu1 }
 0x3d6   :  { %v659_v48 = vsel %vm428_vm4, %v641_v39, -inf }
 0x3d7   :  { %v660_v52 = vmax.f32 %v654_v46, %v659_v48  ;;  %v666_v50 = vmax.f32 %v662_v49, %v664_v38 }
 0x3d9   :  { %v665_v51 = vmax.f32 %v658_v55, %v660_v52 }
 0x3db   :  { %v667_v56 = vmax.f32 %v665_v51, %v666_v50 }
 0x3dd   :  { %v668_v57 = vrot.slane %v667_v56, 4 }
 0x3df   :  { %v669_v60 = vmax.f32 %v667_v56, %v668_v57 }
 0x3e1   :  { %v670_v62 = vrot.slane %v669_v60, 2 }
 0x3e3   :  { %v671_v63 = vmax.f32 %v669_v60, %v670_v62 }
 0x3e5   :  { %v672_v0 = vrot.slane %v671_v63, 1 }
 0x3e7   :  { %v673_v10 = vmax.f32 %v671_v63, %v672_v0 }
 0x3e9   :  { %v674_v11 = vsub.f32 %v622_v30, %v673_v10  ;;  %v675_v20 = vsub.f32 %v625_v31, %v673_v10  ;;  %v676_v23 = vsub.f32 %v2735_v21, %v673_v10  ;;  %v677_v24 = vsub.f32 %v2736_v14, %v673_v10 }
 0x3ea   :  { %v678_v15 = vsub.f32 %v638_v32, %v673_v10  ;;  %v679_v18 = vsub.f32 %v641_v39, %v673_v10  ;;  %v680_v43 = vsub.f32 %v2739_v45, %v673_v10  ;;  %v681_v44 = vsub.f32 %v2740_v33, %v673_v10 }
 0x3eb   :  { %v682_v16 = vmul.f32 1.442695, %v674_v11  ;;  %v684_v19 = vmul.f32 1.442695, %v675_v20  ;;  %v686_v27 = vmul.f32 1.442695, %v676_v23 }
 0x3ec   :  { %v688_v28 = vmul.f32 1.442695, %v677_v24  ;;  %v690_v29 = vmul.f32 1.442695, %v678_v15  ;;  %v692_v34 = vmul.f32 1.442695, %v679_v18 }
 0x3ed   :  { %2978 = vpow2.f32 %v682_v16  ;;  %v694_v35 = vmul.f32 1.442695, %v680_v43  ;;  %v696_v30 = vmul.f32 1.442695, %v681_v44 }
 0x3ee   :  { %2980 = vpow2.f32 %v684_v19 }
 0x3ef   :  { %2982 = vpow2.f32 %v686_v27 }
 0x3f0   :  { %2984 = vpow2.f32 %v688_v28 }
 0x3f1   :  { %2986 = vpow2.f32 %v690_v29 }
 0x3f2   :  { %2988 = vpow2.f32 %v692_v34 }
 0x3f3   :  { %2990 = vpow2.f32 %v694_v35 }
 0x3f4   :  { %2992 = vpow2.f32 %v696_v30 }
 0x3fa   :  { %v2979_v21 = vpop.eup %2978 }
 0x3fb   :  { %v2981_v14 = vpop.eup %2980  ;;  %v698_v31 = vsel %vm428_vm4, %v2979_v21, 0.0 }
 0x3fc   :  { %v2983_v32 = vpop.eup %2982  ;;  %v699_v12 = vsel %vm428_vm4, %v2981_v14, 0.0 }
 0x3fd   :  { %v2985_v45 = vpop.eup %2984  ;;  %v700_v37 = vadd.f32 %v699_v12, %v698_v31  ;;  %v701_v38 = vsel %vm428_vm4, %v2983_v32, 0.0 }
 0x3fe   :  { %v2987_v33 = vpop.eup %2986  ;;  %v703_v40 = vsel %vm428_vm4, %v2985_v45, 0.0 }
 0x3ff   :  { %v702_v39 = vadd.f32 %v701_v38, %v700_v37  ;;  %v2989_v41 = vpop.eup %2988  ;;  %v705_v48 = vsel %vm428_vm4, %v2987_v33, 0.0 }
 0x400   :  { %v2991_v49 = vpop.eup %2990  ;;  %v707_v52 = vsel %vm428_vm4, %v2989_v41, 0.0 }
 0x401   :  { %v704_v46 = vadd.f32 %v703_v40, %v702_v39  ;;  %v2993_v50 = vpop.eup %2992  ;;  %v709_v56 = vsel %vm428_vm4, %v2991_v49, 0.0 }
 0x402   :  { %v711_v60 = vsel %vm428_vm4, %v2993_v50, 0.0 }
 0x403   :  { %v706_v55 = vadd.f32 %v705_v48, %v704_v46 }
 0x405   :  { %v708_v51 = vadd.f32 %v707_v52, %v706_v55 }
 0x407   :  { %v710_v57 = vadd.f32 %v709_v56, %v708_v51 }
 0x409   :  { %v712_v62 = vadd.f32 %v711_v60, %v710_v57 }
 0x40b   :  { %v713_v63 = vrot.slane %v712_v62, 4 }
 0x40d   :  { %v714_v0 = vadd.f32 %v713_v63, %v712_v62 }
 0x40f   :  { %v715_v10 = vrot.slane %v714_v0, 2 }
 0x411   :  { %v716_v11 = vadd.f32 %v715_v10, %v714_v0 }
 0x413   :  { %v717_v20 = vrot.slane %v716_v11, 1 }
 0x415   :  { %v718_v23 = vadd.f32 %v717_v20, %v716_v11 }
 0x417   :  { %2994 = vrcp.f32 %v718_v23 }
 0x424   :  { %v2995_v24 = vpop.eup %2994 }
 0x425   :  { %v726_v15 = vmul.f32 %v2995_v24, %v2991_v49  ;;  %v727_v16 = vmul.f32 %v2995_v24, %v2993_v50  ;;  %v720_v19 = vmul.f32 %v2995_v24, %v2979_v21  ;;  %v721_v27 = vmul.f32 %v2995_v24, %v2981_v14 }
 0x426   :  { %v724_v28 = vmul.f32 %v2995_v24, %v2987_v33  ;;  %v725_v43 = vmul.f32 %v2995_v24, %v2989_v41  ;;  %v722_v34 = vmul.f32 %v2995_v24, %v2983_v32  ;;  %v723_v35 = vmul.f32 %v2995_v24, %v2985_v45 }
 0x427   :  { %v731_v18 = vpack.c.bf16 %v727_v16, %v726_v15  ;;  %v728_v29 = vpack.c.bf16 %v721_v27, %v720_v19  ;;  %v807_v21 = vsel %vm359_vm1, %v3325_v36, 0 }
 0x428   :  { %v730_v44 = vpack.c.bf16 %v725_v43, %v724_v28  ;;  %v729_v30 = vpack.c.bf16 %v723_v35, %v722_v34 }
 0x429   :  { %2742 = vmatpush3.bf16.msra.mxu0 %v731_v18 }
 0x42a   :  { %2743 = vmatprep.subr.bf16.mxu0 %v3125_v61 }
 0x42d   :  { %2744 = vmatpush3.bf16.msra.mxu0 %v730_v44 }
 0x42e   :  { %2745 = vmatprep.subr.bf16.mxu0 %v3125_v61 }
 0x431   :  { %2746 = vmatpush3.bf16.msra.mxu0 %v729_v30 }
 0x432   :  { %2747 = vmatprep.subr.bf16.mxu0 %v3125_v61 }
 0x435   :  { %2748 = vmatpush3.bf16.msra.mxu0 %v728_v29 }
 0x436   :  { %2911 = vmatprep.subr.msk.bf16.mxu0 %vm359_vm1, %v3325_v36 }
 0x438   :  { %2750 = vmatmul.mubr.msk.bf16.vlgmr.msra.gmra.mxu0 %vm428_vm4, %v733_v22 }
 0x439   :  { %2754 = vmatpush3.bf16.msra.mxu0 %v807_v21  ;;  %2755 = vmatprep.mubr.msk.bf16.mxu0 %vm346_vm2, %v3289_v2 }
 0x43a   :  { %2785 = vmatprep.subr.bf16.mxu0 %v3125_v61 }
 0x440   :  { %2756 = vmatmul.mubr.msk.bf16.vlgmr.msra.gmra.mxu0 %vm346_vm2, %v3293_v4 }
 0x441   :  { %2759 = vmatprep.mubr.msk.bf16.mxu0 %vm346_vm2, %v3297_v6 }
 0x448   :  { %2760 = vmatmul.mubr.msk.bf16.gmra.mxu0 %vm346_vm2, %v3301_v8 }
 0x449   :  { %2793 = vmatprep.mubr.msk.bf16.mxu0 %vm3126_vm3, %v3125_v61 }
 0x4f8   :  { %v771_v58 = vpop.f32.mrf.mxu0 }
 0x4f9   :  { %777 = vst.msk [vmem:[#allocation2 + $0x8] sm:$0xff] %vm428_vm4, %v771_v58 }
 0x4fa   :  { %v2751_v22 = vpop.f32.mrf.mxu0 }
 0x4fc   :  { %v774_v36 = vpop.f32.mrf.mxu0 }
 0x4fe   :  { %v2752_v2 = vpop.f32.mrf.mxu0 }
 0x500   :  { %v2757_v14 = vpop.f32.mrf.mxu0 }
 0x501   :  { %v876_v41 = vsel %vm428_vm4, %v2757_v14, -inf }
 0x502   :  { %v843_v31 = vpop.f32.mrf.mxu0 }
 0x503   :  { %v874_v46 = vsel %vm428_vm4, %v843_v31, -inf }
 0x504   :  { %v2758_v32 = vpop.f32.mrf.mxu0 }
 0x505   :  { %v877_v6 = vsel %vm428_vm4, %v2758_v32, -inf }
 0x506   :  { %v846_v12 = vpop.f32.mrf.mxu0 }
 0x507   :  { %v875_v48 = vsel %vm428_vm4, %v846_v12, -inf }
 0x508   :  { %v2761_v4 = vpop.f32.mrf.mxu0 }
 0x509   :  { %v882_v8 = vsel %vm428_vm4, %v2761_v4, -inf }
 0x50a   :  { %v859_v45 = vpop.f32.mrf.mxu0  ;;  %v883_v55 = vmax.f32 %v876_v41, %v882_v8 }
 0x50b   :  { %v878_v38 = vsel %vm428_vm4, %v859_v45, -inf }
 0x50c   :  { %v2762_v37 = vpop.f32.mrf.mxu0  ;;  %v879_v52 = vmax.f32 %v874_v46, %v878_v38 }
 0x50d   :  { %v884_v33 = vsel %vm428_vm4, %v2762_v37, -inf }
 0x50e   :  { %v885_v39 = vmax.f32 %v877_v6, %v884_v33  ;;  %v862_v40 = vpop.f32.mrf.mxu0 }
 0x50f   :  { %v880_v49 = vsel %vm428_vm4, %v862_v40, -inf }
 0x510   :  { %v881_v50 = vmax.f32 %v875_v48, %v880_v49  ;;  %v887_v51 = vmax.f32 %v883_v55, %v885_v39 }
 0x512   :  { %v886_v56 = vmax.f32 %v879_v52, %v881_v50 }
 0x514   :  { %v888_v57 = vmax.f32 %v886_v56, %v887_v51 }
 0x516   :  { %v889_v60 = vrot.slane %v888_v57, 4 }
 0x518   :  { %v890_v62 = vmax.f32 %v888_v57, %v889_v60 }
 0x51a   :  { %v891_v63 = vrot.slane %v890_v62, 2 }
 0x51c   :  { %v892_v0 = vmax.f32 %v890_v62, %v891_v63 }
 0x51e   :  { %v893_v10 = vrot.slane %v892_v0, 1 }
 0x520   :  { %v894_v11 = vmax.f32 %v892_v0, %v893_v10 }
 0x522   :  { %v895_v20 = vsub.f32 %v843_v31, %v894_v11  ;;  %v896_v23 = vsub.f32 %v846_v12, %v894_v11  ;;  %v897_v24 = vsub.f32 %v2757_v14, %v894_v11  ;;  %v898_v15 = vsub.f32 %v2758_v32, %v894_v11 }
 0x523   :  { %v899_v16 = vsub.f32 %v859_v45, %v894_v11  ;;  %v900_v28 = vsub.f32 %v862_v40, %v894_v11  ;;  %v901_v29 = vsub.f32 %v2761_v4, %v894_v11  ;;  %v902_v34 = vsub.f32 %v2762_v37, %v894_v11 }
 0x524   :  { %v903_v19 = vmul.f32 1.442695, %v895_v20  ;;  %v905_v27 = vmul.f32 1.442695, %v896_v23  ;;  %v907_v18 = vmul.f32 1.442695, %v897_v24 }
 0x525   :  { %v909_v43 = vmul.f32 1.442695, %v898_v15  ;;  %v911_v44 = vmul.f32 1.442695, %v899_v16  ;;  %v913_v35 = vmul.f32 1.442695, %v900_v28 }
 0x526   :  { %2996 = vpow2.f32 %v903_v19  ;;  %v915_v30 = vmul.f32 1.442695, %v901_v29  ;;  %v917_v21 = vmul.f32 1.442695, %v902_v34 }
 0x527   :  { %2998 = vpow2.f32 %v905_v27 }
 0x528   :  { %3000 = vpow2.f32 %v907_v18 }
 0x529   :  { %3002 = vpow2.f32 %v909_v43  ;;  %v1031_v43 = vsel %vm359_vm1, %v3339_v53, 0 }
 0x52a   :  { %3004 = vpow2.f32 %v911_v44 }
 0x52b   :  { %3006 = vpow2.f32 %v913_v35 }
 0x52c   :  { %3008 = vpow2.f32 %v915_v30 }
 0x52d   :  { %3010 = vpow2.f32 %v917_v21 }
 0x533   :  { %v2997_v58 = vpop.eup %2996 }
 0x534   :  { %v2999_v22 = vpop.eup %2998  ;;  %v919_v36 = vsel %vm428_vm4, %v2997_v58, 0.0 }
 0x535   :  { %v3001_v2 = vpop.eup %3000  ;;  %v920_v14 = vsel %vm428_vm4, %v2999_v22, 0.0 }
 0x536   :  { %v3003_v31 = vpop.eup %3002  ;;  %v921_v32 = vadd.f32 %v920_v14, %v919_v36  ;;  %v922_v12 = vsel %vm428_vm4, %v3001_v2, 0.0 }
 0x537   :  { %v3005_v4 = vpop.eup %3004  ;;  %v924_v37 = vsel %vm428_vm4, %v3003_v31, 0.0 }
 0x538   :  { %v923_v45 = vadd.f32 %v922_v12, %v921_v32  ;;  %v3007_v6 = vpop.eup %3006  ;;  %v926_v38 = vsel %vm428_vm4, %v3005_v4, 0.0 }
 0x539   :  { %v3009_v33 = vpop.eup %3008  ;;  %v928_v40 = vsel %vm428_vm4, %v3007_v6, 0.0 }
 0x53a   :  { %v925_v8 = vadd.f32 %v924_v37, %v923_v45  ;;  %v3011_v41 = vpop.eup %3010  ;;  %v930_v48 = vsel %vm428_vm4, %v3009_v33, 0.0 }
 0x53b   :  { %v932_v55 = vsel %vm428_vm4, %v3011_v41, 0.0 }
 0x53c   :  { %v927_v39 = vadd.f32 %v926_v38, %v925_v8 }
 0x53e   :  { %v929_v46 = vadd.f32 %v928_v40, %v927_v39 }
 0x540   :  { %v931_v49 = vadd.f32 %v930_v48, %v929_v46 }
 0x542   :  { %v933_v52 = vadd.f32 %v932_v55, %v931_v49 }
 0x544   :  { %v934_v50 = vrot.slane %v933_v52, 4 }
 0x546   :  { %v935_v51 = vadd.f32 %v934_v50, %v933_v52 }
 0x548   :  { %v936_v56 = vrot.slane %v935_v51, 2 }
 0x54a   :  { %v937_v57 = vadd.f32 %v936_v56, %v935_v51 }
 0x54c   :  { %v938_v60 = vrot.slane %v937_v57, 1 }
 0x54e   :  { %v939_v62 = vadd.f32 %v938_v60, %v937_v57 }
 0x550   :  { %3012 = vrcp.f32 %v939_v62 }
 0x55d   :  { %v3013_v63 = vpop.eup %3012 }
 0x55e   :  { %v947_v0 = vmul.f32 %v3013_v63, %v3009_v33  ;;  %v948_v10 = vmul.f32 %v3013_v63, %v3011_v41  ;;  %v941_v11 = vmul.f32 %v3013_v63, %v2997_v58  ;;  %v942_v20 = vmul.f32 %v3013_v63, %v2999_v22 }
 0x55f   :  { %v945_v24 = vmul.f32 %v3013_v63, %v3005_v4  ;;  %v946_v15 = vmul.f32 %v3013_v63, %v3007_v6  ;;  %v943_v27 = vmul.f32 %v3013_v63, %v3001_v2  ;;  %v944_v18 = vmul.f32 %v3013_v63, %v3003_v31 }
 0x560   :  { %v952_v23 = vpack.c.bf16 %v948_v10, %v947_v0  ;;  %v949_v16 = vpack.c.bf16 %v942_v20, %v941_v11 }
 0x561   :  { %v951_v19 = vpack.c.bf16 %v946_v15, %v945_v24  ;;  %v950_v28 = vpack.c.bf16 %v944_v18, %v943_v27 }
 0x562   :  { %2764 = vmatpush3.bf16.msra.mxu1 %v952_v23 }
 0x563   :  { %2765 = vmatprep.subr.bf16.mxu1 %v3125_v61 }
 0x566   :  { %2766 = vmatpush3.bf16.msra.mxu1 %v951_v19 }
 0x567   :  { %2767 = vmatprep.subr.bf16.mxu1 %v3125_v61 }
 0x56a   :  { %2768 = vmatpush3.bf16.msra.mxu1 %v950_v28 }
 0x56b   :  { %2769 = vmatprep.subr.bf16.mxu1 %v3125_v61 }
 0x56e   :  { %2770 = vmatpush3.bf16.msra.mxu1 %v949_v16 }
 0x56f   :  { %2912 = vmatprep.subr.msk.bf16.mxu1 %vm359_vm1, %v3339_v53 }
 0x571   :  { %2772 = vmatmul.mubr.msk.bf16.vlgmr.msra.gmra.mxu1 %vm428_vm4, %v3334_v47 }
 0x572   :  { %2776 = vmatpush3.bf16.msra.mxu1 %v1031_v43  ;;  %2777 = vmatprep.mubr.msk.bf16.mxu1 %vm346_vm2, %v3287_v1 }
 0x573   :  { %2807 = vmatprep.subr.bf16.mxu1 %v3125_v61 }
 0x579   :  { %2778 = vmatmul.mubr.msk.bf16.vlgmr.msra.gmra.mxu1 %vm346_vm2, %v3291_v3 }
 0x57a   :  { %2781 = vmatprep.mubr.msk.bf16.mxu1 %vm346_vm2, %v3295_v5 }
 0x581   :  { %2782 = vmatmul.mubr.msk.bf16.gmra.mxu1 %vm346_vm2, %v3299_v7 }
 0x582   :  { %2815 = vmatprep.mubr.msk.bf16.mxu1 %vm3126_vm3, %v3125_v61 }
 0x631   :  { %v990_v29 = vpop.f32.mrf.mxu1 }
 0x632   :  { %996 = vst.msk [vmem:[#allocation2 + $0x10] sm:$0xff] %vm428_vm4, %v990_v29 }
 0x633   :  { %v2773_v53 = vpop.f32.mrf.mxu1 }
 0x635   :  { %v993_v44 = vpop.f32.mrf.mxu1 }
 0x637   :  { %v2774_v1 = vpop.f32.mrf.mxu1 }
 0x639   :  { %v2779_v34 = vpop.f32.mrf.mxu1 }
 0x63a   :  { %v1100_v32 = vsel %vm428_vm4, %v2779_v34, -inf }
 0x63b   :  { %v1067_v35 = vpop.f32.mrf.mxu1 }
 0x63c   :  { %v1098_v12 = vsel %vm428_vm4, %v1067_v35, -inf }
 0x63d   :  { %v2780_v30 = vpop.f32.mrf.mxu1 }
 0x63e   :  { %v1101_v5 = vsel %vm428_vm4, %v2780_v30, -inf }
 0x63f   :  { %v1070_v21 = vpop.f32.mrf.mxu1 }
 0x640   :  { %v1099_v4 = vsel %vm428_vm4, %v1070_v21, -inf }
 0x641   :  { %v2783_v3 = vpop.f32.mrf.mxu1 }
 0x642   :  { %v1106_v7 = vsel %vm428_vm4, %v2783_v3, -inf }
 0x643   :  { %v1083_v58 = vpop.f32.mrf.mxu1  ;;  %v1107_v37 = vmax.f32 %v1100_v32, %v1106_v7 }
 0x644   :  { %v1102_v36 = vsel %vm428_vm4, %v1083_v58, -inf }
 0x645   :  { %v2784_v22 = vpop.f32.mrf.mxu1  ;;  %v1103_v6 = vmax.f32 %v1098_v12, %v1102_v36 }
 0x646   :  { %v1108_v2 = vsel %vm428_vm4, %v2784_v22, -inf }
 0x647   :  { %v1109_v14 = vmax.f32 %v1101_v5, %v1108_v2  ;;  %v1086_v31 = vpop.f32.mrf.mxu1 }
 0x648   :  { %v1104_v45 = vsel %vm428_vm4, %v1086_v31, -inf }
 0x649   :  { %v1105_v8 = vmax.f32 %v1099_v4, %v1104_v45  ;;  %v1111_v38 = vmax.f32 %v1107_v37, %v1109_v14 }
 0x64b   :  { %v1110_v33 = vmax.f32 %v1103_v6, %v1105_v8 }
 0x64d   :  { %v1112_v39 = vmax.f32 %v1110_v33, %v1111_v38 }
 0x64f   :  { %v1113_v40 = vrot.slane %v1112_v39, 4 }
 0x651   :  { %v1114_v41 = vmax.f32 %v1112_v39, %v1113_v40 }
 0x653   :  { %v1115_v46 = vrot.slane %v1114_v41, 2 }
 0x655   :  { %v1116_v48 = vmax.f32 %v1114_v41, %v1115_v46 }
 0x657   :  { %v1117_v49 = vrot.slane %v1116_v48, 1 }
 0x659   :  { %v1118_v55 = vmax.f32 %v1116_v48, %v1117_v49 }
 0x65b   :  { %v1119_v52 = vsub.f32 %v1067_v35, %v1118_v55  ;;  %v1120_v50 = vsub.f32 %v1070_v21, %v1118_v55  ;;  %v1121_v51 = vsub.f32 %v2779_v34, %v1118_v55  ;;  %v1122_v56 = vsub.f32 %v2780_v30, %v1118_v55 }
 0x65c   :  { %v1123_v57 = vsub.f32 %v1083_v58, %v1118_v55  ;;  %v1124_v0 = vsub.f32 %v1086_v31, %v1118_v55  ;;  %v1125_v11 = vsub.f32 %v2783_v3, %v1118_v55  ;;  %v1126_v23 = vsub.f32 %v2784_v22, %v1118_v55 }
 0x65d   :  { %v1127_v60 = vmul.f32 1.442695, %v1119_v52  ;;  %v1129_v62 = vmul.f32 1.442695, %v1120_v50  ;;  %v1131_v63 = vmul.f32 1.442695, %v1121_v51 }
 0x65e   :  { %v1133_v10 = vmul.f32 1.442695, %v1122_v56  ;;  %v1135_v20 = vmul.f32 1.442695, %v1123_v57  ;;  %v1137_v24 = vmul.f32 1.442695, %v1124_v0 }
 0x65f   :  { %3014 = vpow2.f32 %v1127_v60  ;;  %v1139_v15 = vmul.f32 1.442695, %v1125_v11  ;;  %v1141_v16 = vmul.f32 1.442695, %v1126_v23  ;;  %v1257_v57 = vsel %vm359_vm1, %v3307_v9, 0 }
 0x660   :  { %3016 = vpow2.f32 %v1129_v62 }
 0x661   :  { %3018 = vpow2.f32 %v1131_v63 }
 0x662   :  { %3020 = vpow2.f32 %v1133_v10 }
 0x663   :  { %3022 = vpow2.f32 %v1135_v20 }
 0x664   :  { %3024 = vpow2.f32 %v1137_v24 }
 0x665   :  { %3026 = vpow2.f32 %v1139_v15 }
 0x666   :  { %3028 = vpow2.f32 %v1141_v16 }
 0x66c   :  { %v3015_v19 = vpop.eup %3014 }
 0x66d   :  { %v3017_v27 = vpop.eup %3016  ;;  %v1143_v18 = vsel %vm428_vm4, %v3015_v19, 0.0 }
 0x66e   :  { %v3019_v28 = vpop.eup %3018  ;;  %v1144_v43 = vsel %vm428_vm4, %v3017_v27, 0.0 }
 0x66f   :  { %v3021_v29 = vpop.eup %3020  ;;  %v1145_v53 = vadd.f32 %v1144_v43, %v1143_v18  ;;  %v1146_v44 = vsel %vm428_vm4, %v3019_v28, 0.0 }
 0x670   :  { %v3023_v1 = vpop.eup %3022  ;;  %v1148_v35 = vsel %vm428_vm4, %v3021_v29, 0.0 }
 0x671   :  { %v1147_v34 = vadd.f32 %v1146_v44, %v1145_v53  ;;  %v3025_v30 = vpop.eup %3024  ;;  %v1150_v3 = vsel %vm428_vm4, %v3023_v1, 0.0 }
 0x672   :  { %v3027_v58 = vpop.eup %3026  ;;  %v1152_v5 = vsel %vm428_vm4, %v3025_v30, 0.0 }
 0x673   :  { %v1149_v21 = vadd.f32 %v1148_v35, %v1147_v34  ;;  %v3029_v7 = vpop.eup %3028  ;;  %v1154_v2 = vsel %vm428_vm4, %v3027_v58, 0.0 }
 0x674   :  { %v1156_v31 = vsel %vm428_vm4, %v3029_v7, 0.0 }
 0x675   :  { %v1151_v22 = vadd.f32 %v1150_v3, %v1149_v21 }
 0x677   :  { %v1153_v36 = vadd.f32 %v1152_v5, %v1151_v22 }
 0x679   :  { %v1155_v14 = vadd.f32 %v1154_v2, %v1153_v36 }
 0x67b   :  { %v1157_v32 = vadd.f32 %v1156_v31, %v1155_v14 }
 0x67d   :  { %v1158_v12 = vrot.slane %v1157_v32, 4 }
 0x67f   :  { %v1159_v4 = vadd.f32 %v1158_v12, %v1157_v32 }
 0x681   :  { %v1160_v45 = vrot.slane %v1159_v4, 2 }
 0x683   :  { %v1161_v37 = vadd.f32 %v1160_v45, %v1159_v4 }
 0x685   :  { %v1162_v6 = vrot.slane %v1161_v37, 1 }
 0x687   :  { %v1163_v8 = vadd.f32 %v1162_v6, %v1161_v37 }
 0x689   :  { %3030 = vrcp.f32 %v1163_v8 }
 0x696   :  { %v3031_v38 = vpop.eup %3030 }
 0x697   :  { %v1171_v33 = vmul.f32 %v3031_v38, %v3027_v58  ;;  %v1172_v39 = vmul.f32 %v3031_v38, %v3029_v7  ;;  %v1165_v40 = vmul.f32 %v3031_v38, %v3015_v19  ;;  %v1166_v41 = vmul.f32 %v3031_v38, %v3017_v27 }
 0x698   :  { %v1169_v48 = vmul.f32 %v3031_v38, %v3023_v1  ;;  %v1170_v49 = vmul.f32 %v3031_v38, %v3025_v30  ;;  %v1167_v50 = vmul.f32 %v3031_v38, %v3019_v28  ;;  %v1168_v51 = vmul.f32 %v3031_v38, %v3021_v29 }
 0x699   :  { %v1176_v46 = vpack.c.bf16 %v1172_v39, %v1171_v33  ;;  %v1173_v55 = vpack.c.bf16 %v1166_v41, %v1165_v40 }
 0x69a   :  { %v1175_v52 = vpack.c.bf16 %v1170_v49, %v1169_v48  ;;  %v1174_v56 = vpack.c.bf16 %v1168_v51, %v1167_v50 }
 0x69b   :  { %2786 = vmatpush3.bf16.msra.mxu0 %v1176_v46 }
 0x69c   :  { %2787 = vmatprep.subr.bf16.mxu0 %v3125_v61 }
 0x69f   :  { %2788 = vmatpush3.bf16.msra.mxu0 %v1175_v52 }
 0x6a0   :  { %2789 = vmatprep.subr.bf16.mxu0 %v3125_v61 }
 0x6a3   :  { %2790 = vmatpush3.bf16.msra.mxu0 %v1174_v56 }
 0x6a4   :  { %2791 = vmatprep.subr.bf16.mxu0 %v3125_v61 }
 0x6a7   :  { %2792 = vmatpush3.bf16.msra.mxu0 %v1173_v55 }
 0x6a8   :  { %2913 = vmatprep.subr.msk.bf16.mxu0 %vm359_vm1, %v3307_v9 }
 0x6aa   :  { %2794 = vmatmul.mubr.msk.bf16.vlgmr.msra.gmra.mxu0 %vm428_vm4, %v1178_v54 }
 0x6ab   :  { %2798 = vmatpush3.bf16.msra.mxu0 %v1257_v57  ;;  %2799 = vmatprep.mubr.msk.bf16.mxu0 %vm346_vm2, %v3356_v13 }
 0x6ac   :  { %2829 = vmatprep.subr.bf16.mxu0 %v3125_v61 }
 0x6b2   :  { %2800 = vmatmul.mubr.msk.bf16.vlgmr.msra.gmra.mxu0 %vm346_vm2, %v3360_v17 }
 0x6b3   :  { %2803 = vmatprep.mubr.msk.bf16.mxu0 %vm346_vm2, %v3368_v25 }
 0x6ba   :  { %2804 = vmatmul.mubr.msk.bf16.gmra.mxu0 %vm346_vm2, %v3373_v26 }
 0x6bb   :  { %2837 = vmatprep.mubr.msk.bf16.mxu0 %vm3126_vm3, %v3125_v61 }
 0x76a   :  { %v1216_v9 = vpop.f32.mrf.mxu0 }
 0x76b   :  { %1222 = vst.msk [vmem:[#allocation2 + $0x18] sm:$0xff] %vm428_vm4, %v1216_v9 }
 0x76c   :  { %v2795_v47 = vpop.f32.mrf.mxu0 }
 0x76e   :  { %v1219_v54 = vpop.f32.mrf.mxu0 }
 0x770   :  { %v2796_v13 = vpop.f32.mrf.mxu0 }
 0x772   :  { %v2801_v60 = vpop.f32.mrf.mxu0 }
 0x773   :  { %v1326_v16 = vsel %vm428_vm4, %v2801_v60, -inf }
 0x774   :  { %v1293_v62 = vpop.f32.mrf.mxu0 }
 0x775   :  { %v1324_v19 = vsel %vm428_vm4, %v1293_v62, -inf }
 0x776   :  { %v2802_v63 = vpop.f32.mrf.mxu0 }
 0x777   :  { %v1327_v25 = vsel %vm428_vm4, %v2802_v63, -inf }
 0x778   :  { %v1296_v0 = vpop.f32.mrf.mxu0 }
 0x779   :  { %v1325_v27 = vsel %vm428_vm4, %v1296_v0, -inf }
 0x77a   :  { %v2805_v17 = vpop.f32.mrf.mxu0 }
 0x77b   :  { %v1332_v26 = vsel %vm428_vm4, %v2805_v17, -inf }
 0x77c   :  { %v1309_v10 = vpop.f32.mrf.mxu0  ;;  %v1333_v28 = vmax.f32 %v1326_v16, %v1332_v26 }
 0x77d   :  { %v1328_v20 = vsel %vm428_vm4, %v1309_v10, -inf }
 0x77e   :  { %v2806_v11 = vpop.f32.mrf.mxu0  ;;  %v1329_v43 = vmax.f32 %v1324_v19, %v1328_v20 }
 0x77f   :  { %v1334_v23 = vsel %vm428_vm4, %v2806_v11, -inf }
 0x780   :  { %v1335_v24 = vmax.f32 %v1327_v25, %v1334_v23  ;;  %v1312_v15 = vpop.f32.mrf.mxu0 }
 0x781   :  { %v1330_v18 = vsel %vm428_vm4, %v1312_v15, -inf }
 0x782   :  { %v1331_v29 = vmax.f32 %v1325_v27, %v1330_v18  ;;  %v1337_v53 = vmax.f32 %v1333_v28, %v1335_v24 }
 0x784   :  { %v1336_v44 = vmax.f32 %v1329_v43, %v1331_v29 }
 0x786   :  { %v1338_v1 = vmax.f32 %v1336_v44, %v1337_v53  ;;  %v1404_v44 = vpop.permute.xlu1 %1403 }
 0x788   :  { %v1339_v34 = vrot.slane %v1338_v1, 4 }
 0x78a   :  { %v1340_v35 = vmax.f32 %v1338_v1, %v1339_v34 }
 0x78c   :  { %v1341_v30 = vrot.slane %v1340_v35, 2 }
 0x78e   :  { %v1342_v21 = vmax.f32 %v1340_v35, %v1341_v30 }
 0x790   :  { %v1343_v3 = vrot.slane %v1342_v21, 1 }
 0x792   :  { %v1344_v58 = vmax.f32 %v1342_v21, %v1343_v3  ;;  %v1474_v21 = vpop.permute.xlu1 %1473 }
 0x794   :  { %v1345_v22 = vsub.f32 %v1293_v62, %v1344_v58  ;;  %v1346_v5 = vsub.f32 %v1296_v0, %v1344_v58  ;;  %v1347_v7 = vsub.f32 %v2801_v60, %v1344_v58  ;;  %v1348_v36 = vsub.f32 %v2802_v63, %v1344_v58 }
 0x795   :  { %v1349_v2 = vsub.f32 %v1309_v10, %v1344_v58  ;;  %v1350_v12 = vsub.f32 %v1312_v15, %v1344_v58  ;;  %v1351_v45 = vsub.f32 %v2805_v17, %v1344_v58  ;;  %v1352_v6 = vsub.f32 %v2806_v11, %v1344_v58 }
 0x796   :  { %v1353_v14 = vmul.f32 1.442695, %v1345_v22  ;;  %v1355_v31 = vmul.f32 1.442695, %v1346_v5  ;;  %v1357_v32 = vmul.f32 1.442695, %v1347_v7  ;;  %v1465_v58 = vpop.trf.xlu1 }
 0x797   :  { %v1359_v4 = vmul.f32 1.442695, %v1348_v36  ;;  %v1361_v37 = vmul.f32 1.442695, %v1349_v2  ;;  %v1363_v8 = vmul.f32 1.442695, %v1350_v12 }
 0x798   :  { %3032 = vpow2.f32 %v1353_v14  ;;  %v1365_v38 = vmul.f32 1.442695, %v1351_v45  ;;  %v1367_v33 = vmul.f32 1.442695, %v1352_v6  ;;  %v1488_v22 = vsel %vm359_vm1, %v1474_v21, 0 }
 0x799   :  { %3034 = vpow2.f32 %v1355_v31 }
 0x79a   :  { %3036 = vpow2.f32 %v1357_v32  ;;  %v1466_v5 = vpop.trf.xlu1 }
 0x79b   :  { %3038 = vpow2.f32 %v1359_v4 }
 0x79c   :  { %3040 = vpow2.f32 %v1361_v37 }
 0x79d   :  { %3042 = vpow2.f32 %v1363_v8 }
 0x79e   :  { %3044 = vpow2.f32 %v1365_v38  ;;  %v1467_v7 = vpop.trf.xlu1 }
 0x79f   :  { %3046 = vpow2.f32 %v1367_v33 }
 0x7a2   :  { %v1468_v36 = vpop.trf.xlu1 }
 0x7a5   :  { %v3033_v39 = vpop.eup %3032 }
 0x7a6   :  { %v3035_v40 = vpop.eup %3034  ;;  %v1369_v41 = vsel %vm428_vm4, %v3033_v39, 0.0 }
 0x7a7   :  { %v3037_v46 = vpop.eup %3036  ;;  %v1370_v48 = vsel %vm428_vm4, %v3035_v40, 0.0 }
 0x7a8   :  { %v3039_v49 = vpop.eup %3038  ;;  %v1371_v55 = vadd.f32 %v1370_v48, %v1369_v41  ;;  %v1372_v52 = vsel %vm428_vm4, %v3037_v46, 0.0 }
 0x7a9   :  { %v3041_v50 = vpop.eup %3040  ;;  %v1374_v56 = vsel %vm428_vm4, %v3039_v49, 0.0 }
 0x7aa   :  { %v1373_v51 = vadd.f32 %v1372_v52, %v1371_v55  ;;  %v3043_v57 = vpop.eup %3042  ;;  %v1376_v47 = vsel %vm428_vm4, %v3041_v50, 0.0 }
 0x7ab   :  { %v3045_v54 = vpop.eup %3044  ;;  %v1378_v60 = vsel %vm428_vm4, %v3043_v57, 0.0 }
 0x7ac   :  { %v1375_v9 = vadd.f32 %v1374_v56, %v1373_v51  ;;  %v3047_v62 = vpop.eup %3046  ;;  %v1380_v0 = vsel %vm428_vm4, %v3045_v54, 0.0 }
 0x7ad   :  { %v1382_v10 = vsel %vm428_vm4, %v3047_v62, 0.0 }
 0x7ae   :  { %v1377_v13 = vadd.f32 %v1376_v47, %v1375_v9 }
 0x7b0   :  { %v1379_v63 = vadd.f32 %v1378_v60, %v1377_v13 }
 0x7b2   :  { %v1381_v17 = vadd.f32 %v1380_v0, %v1379_v63 }
 0x7b4   :  { %v1383_v11 = vadd.f32 %v1382_v10, %v1381_v17 }
 0x7b6   :  { %v1384_v25 = vrot.slane %v1383_v11, 4 }
 0x7b8   :  { %v1385_v26 = vadd.f32 %v1384_v25, %v1383_v11 }
 0x7ba   :  { %v1386_v20 = vrot.slane %v1385_v26, 2 }
 0x7bc   :  { %v1387_v23 = vadd.f32 %v1386_v20, %v1385_v26 }
 0x7be   :  { %v1388_v24 = vrot.slane %v1387_v23, 1 }
 0x7c0   :  { %v1389_v15 = vadd.f32 %v1388_v24, %v1387_v23 }
 0x7c2   :  { %3048 = vrcp.f32 %v1389_v15 }
 0x7cf   :  { %v3049_v16 = vpop.eup %3048 }
 0x7d0   :  { %v1397_v19 = vmul.f32 %v3049_v16, %v3045_v54  ;;  %v1398_v27 = vmul.f32 %v3049_v16, %v3047_v62  ;;  %v1391_v18 = vmul.f32 %v3049_v16, %v3033_v39  ;;  %v1392_v28 = vmul.f32 %v3049_v16, %v3035_v40 }
 0x7d1   :  { %v1395_v29 = vmul.f32 %v3049_v16, %v3041_v50  ;;  %v1396_v53 = vmul.f32 %v3049_v16, %v3043_v57  ;;  %v1393_v35 = vmul.f32 %v3049_v16, %v3037_v46  ;;  %v1394_v30 = vmul.f32 %v3049_v16, %v3039_v49 }
 0x7d2   :  { %v1402_v43 = vpack.c.bf16 %v1398_v27, %v1397_v19  ;;  %v1399_v1 = vpack.c.bf16 %v1392_v28, %v1391_v18 }
 0x7d3   :  { %v1401_v34 = vpack.c.bf16 %v1396_v53, %v1395_v29  ;;  %v1400_v3 = vpack.c.bf16 %v1394_v30, %v1393_v35 }
 0x7d4   :  { %2808 = vmatpush3.bf16.msra.mxu1 %v1402_v43 }
 0x7d5   :  { %2809 = vmatprep.subr.bf16.mxu1 %v3125_v61 }
 0x7d8   :  { %2810 = vmatpush3.bf16.msra.mxu1 %v1401_v34 }
 0x7d9   :  { %2811 = vmatprep.subr.bf16.mxu1 %v3125_v61 }
 0x7dc   :  { %2812 = vmatpush3.bf16.msra.mxu1 %v1400_v3 }
 0x7dd   :  { %2813 = vmatprep.subr.bf16.mxu1 %v3125_v61 }
 0x7e0   :  { %2814 = vmatpush3.bf16.msra.mxu1 %v1399_v1 }
 0x7e1   :  { %2914 = vmatprep.subr.msk.bf16.mxu1 %vm359_vm1, %v1474_v21 }
 0x7e3   :  { %2816 = vmatmul.mubr.msk.bf16.vlgmr.msra.gmra.mxu1 %vm428_vm4, %v1404_v44 }
 0x7e4   :  { %2820 = vmatpush3.bf16.msra.mxu1 %v1488_v22  ;;  %2821 = vmatprep.mubr.msk.bf16.mxu1 %vm346_vm2, %v1465_v58 }
 0x7e5   :  { %2851 = vmatprep.subr.bf16.mxu1 %v3125_v61 }
 0x7eb   :  { %2822 = vmatmul.mubr.msk.bf16.vlgmr.msra.gmra.mxu1 %vm346_vm2, %v1466_v5 }
 0x7ec   :  { %2825 = vmatprep.mubr.msk.bf16.mxu1 %vm346_vm2, %v1467_v7 }
 0x7f3   :  { %2826 = vmatmul.mubr.msk.bf16.gmra.mxu1 %vm346_vm2, %v1468_v36 }
 0x7f4   :  { %2859 = vmatprep.mubr.msk.bf16.mxu1 %vm3126_vm3, %v3125_v61 }
 0x8a3   :  { %v1442_v2 = vpop.f32.mrf.mxu1 }
 0x8a4   :  { %1449 = vrot.lane.b32.xlu1 %v1442_v2, %s3124_s2 }
 0x8a5   :  { %v2817_v14 = vpop.f32.mrf.mxu1 }
 0x8a7   :  { %v1445_v31 = vpop.f32.mrf.mxu1 }
 0x8a8   :  { %v1695_v31 = vpop.trf.xlu1 }
 0x8a9   :  { %v2818_v32 = vpop.f32.mrf.mxu1 }
 0x8ab   :  { %v2823_v12 = vpop.f32.mrf.mxu1 }
 0x8ac   :  { %v1557_v49 = vsel %vm428_vm4, %v2823_v12, -inf }
 0x8ad   :  { %v1524_v4 = vpop.f32.mrf.mxu1 }
 0x8ae   :  { %v1555_v55 = vsel %vm428_vm4, %v1524_v4, -inf }
 0x8af   :  { %v2824_v45 = vpop.f32.mrf.mxu1 }
 0x8b0   :  { %v1558_v33 = vsel %vm428_vm4, %v2824_v45, -inf }
 0x8b1   :  { %v1527_v37 = vpop.f32.mrf.mxu1 }
 0x8b2   :  { %v1556_v52 = vsel %vm428_vm4, %v1527_v37, -inf }
 0x8b3   :  { %v2827_v6 = vpop.f32.mrf.mxu1 }
 0x8b4   :  { %v1563_v39 = vsel %vm428_vm4, %v2827_v6, -inf }
 0x8b5   :  { %v1540_v8 = vpop.f32.mrf.mxu1  ;;  %v1564_v51 = vmax.f32 %v1557_v49, %v1563_v39 }
 0x8b6   :  { %v1559_v40 = vsel %vm428_vm4, %v1540_v8, -inf }
 0x8b7   :  { %v2828_v38 = vpop.f32.mrf.mxu1  ;;  %v1560_v56 = vmax.f32 %v1555_v55, %v1559_v40 }
 0x8b8   :  { %v1565_v41 = vsel %vm428_vm4, %v2828_v38, -inf }
 0x8b9   :  { %v1566_v46 = vmax.f32 %v1558_v33, %v1565_v41  ;;  %v1543_v48 = vpop.f32.mrf.mxu1  ;;  %v1696_v33 = vpop.trf.xlu1 }
 0x8ba   :  { %v1561_v50 = vsel %vm428_vm4, %v1543_v48, -inf }
 0x8bb   :  { %v1562_v57 = vmax.f32 %v1556_v52, %v1561_v50  ;;  %v1568_v9 = vmax.f32 %v1564_v51, %v1566_v46 }
 0x8bd   :  { %v1567_v47 = vmax.f32 %v1560_v56, %v1562_v57  ;;  %v1697_v46 = vpop.trf.xlu1 }
 0x8bf   :  { %v1569_v54 = vmax.f32 %v1567_v47, %v1568_v9 }
 0x8c1   :  { %v1570_v13 = vrot.slane %v1569_v54, 4  ;;  %v1698_v52 = vpop.trf.xlu1 }
 0x8c3   :  { %v1571_v60 = vmax.f32 %v1569_v54, %v1570_v13 }
 0x8c5   :  { %v1572_v62 = vrot.slane %v1571_v60, 2  ;;  %v3547_v51 = vpop.trf.xlu1 }
 0x8c7   :  { %v1573_v63 = vmax.f32 %v1571_v60, %v1572_v62 }
 0x8c9   :  { %v1574_v0 = vrot.slane %v1573_v63, 1  ;;  %v3549_v56 = vpop.trf.xlu1 }
 0x8cb   :  { %v1575_v17 = vmax.f32 %v1573_v63, %v1574_v0 }
 0x8cd   :  { %v1576_v10 = vsub.f32 %v1524_v4, %v1575_v17  ;;  %v1577_v11 = vsub.f32 %v1527_v37, %v1575_v17  ;;  %v1578_v25 = vsub.f32 %v2823_v12, %v1575_v17  ;;  %v1579_v26 = vsub.f32 %v2824_v45, %v1575_v17  ;;  %v3551_v54 = vpop.trf.xlu1 }
 0x8ce   :  { %v1580_v20 = vsub.f32 %v1540_v8, %v1575_v17  ;;  %v1581_v16 = vsub.f32 %v1543_v48, %v1575_v17  ;;  %v1582_v27 = vsub.f32 %v2827_v6, %v1575_v17  ;;  %v1583_v28 = vsub.f32 %v2828_v38, %v1575_v17 }
 0x8cf   :  { %v1584_v23 = vmul.f32 1.442695, %v1576_v10  ;;  %v1586_v24 = vmul.f32 1.442695, %v1577_v11  ;;  %v1588_v15 = vmul.f32 1.442695, %v1578_v25 }
 0x8d0   :  { %v1590_v19 = vmul.f32 1.442695, %v1579_v26  ;;  %v1592_v18 = vmul.f32 1.442695, %v1580_v20  ;;  %v1594_v43 = vmul.f32 1.442695, %v1581_v16 }
 0x8d1   :  { %3050 = vpow2.f32 %v1584_v23  ;;  %v1596_v29 = vmul.f32 1.442695, %v1582_v27  ;;  %v1598_v53 = vmul.f32 1.442695, %v1583_v28  ;;  %v3554_v26 = vpop.trf.xlu1 }
 0x8d2   :  { %3052 = vpow2.f32 %v1586_v24  ;;  %v1718_v24 = vsel %vm359_vm1, %v3385_v42, 0 }
 0x8d3   :  { %3054 = vpow2.f32 %v1588_v15 }
 0x8d4   :  { %3056 = vpow2.f32 %v1590_v19 }
 0x8d5   :  { %3058 = vpow2.f32 %v1592_v18 }
 0x8d6   :  { %3060 = vpow2.f32 %v1594_v43 }
 0x8d7   :  { %3062 = vpow2.f32 %v1596_v29 }
 0x8d8   :  { %3064 = vpow2.f32 %v1598_v53 }
 0x8de   :  { %v3051_v44 = vpop.eup %3050 }
 0x8df   :  { %v3053_v1 = vpop.eup %3052  ;;  %v1600_v34 = vsel %vm428_vm4, %v3051_v44, 0.0 }
 0x8e0   :  { %v3055_v35 = vpop.eup %3054  ;;  %v1601_v30 = vsel %vm428_vm4, %v3053_v1, 0.0 }
 0x8e1   :  { %v3057_v21 = vpop.eup %3056  ;;  %v1602_v3 = vadd.f32 %v1601_v30, %v1600_v34  ;;  %v1603_v58 = vsel %vm428_vm4, %v3055_v35, 0.0 }
 0x8e2   :  { %v3059_v22 = vpop.eup %3058  ;;  %v1605_v7 = vsel %vm428_vm4, %v3057_v21, 0.0 }
 0x8e3   :  { %v1604_v5 = vadd.f32 %v1603_v58, %v1602_v3  ;;  %v3061_v36 = vpop.eup %3060  ;;  %v1607_v14 = vsel %vm428_vm4, %v3059_v22, 0.0 }
 0x8e4   :  { %v3063_v32 = vpop.eup %3062  ;;  %v1609_v4 = vsel %vm428_vm4, %v3061_v36, 0.0 }
 0x8e5   :  { %v1606_v2 = vadd.f32 %v1605_v7, %v1604_v5  ;;  %v3065_v45 = vpop.eup %3064  ;;  %v1611_v6 = vsel %vm428_vm4, %v3063_v32, 0.0 }
 0x8e6   :  { %v1613_v38 = vsel %vm428_vm4, %v3065_v45, 0.0 }
 0x8e7   :  { %v1608_v12 = vadd.f32 %v1607_v14, %v1606_v2 }
 0x8e9   :  { %v1610_v37 = vadd.f32 %v1609_v4, %v1608_v12 }
 0x8eb   :  { %v1612_v8 = vadd.f32 %v1611_v6, %v1610_v37 }
 0x8ed   :  { %v1614_v39 = vadd.f32 %v1613_v38, %v1612_v8 }
 0x8ef   :  { %v1615_v40 = vrot.slane %v1614_v39, 4 }
 0x8f1   :  { %v1616_v41 = vadd.f32 %v1615_v40, %v1614_v39 }
 0x8f3   :  { %v1617_v48 = vrot.slane %v1616_v41, 2 }
 0x8f5   :  { %v1618_v49 = vadd.f32 %v1617_v48, %v1616_v41 }
 0x8f7   :  { %v1619_v55 = vrot.slane %v1618_v49, 1 }
 0x8f9   :  { %v1620_v50 = vadd.f32 %v1619_v55, %v1618_v49 }
 0x8fb   :  { %3066 = vrcp.f32 %v1620_v50 }
 0x908   :  { %v3067_v57 = vpop.eup %3066 }
 0x909   :  { %v1628_v9 = vmul.f32 %v3067_v57, %v3063_v32  ;;  %v1629_v47 = vmul.f32 %v3067_v57, %v3065_v45  ;;  %v1622_v13 = vmul.f32 %v3067_v57, %v3051_v44  ;;  %v1623_v60 = vmul.f32 %v3067_v57, %v3053_v1 }
 0x90a   :  { %v1626_v63 = vmul.f32 %v3067_v57, %v3059_v22  ;;  %v1627_v0 = vmul.f32 %v3067_v57, %v3061_v36  ;;  %v1624_v11 = vmul.f32 %v3067_v57, %v3055_v35  ;;  %v1625_v25 = vmul.f32 %v3067_v57, %v3057_v21 }
 0x90b   :  { %v1633_v62 = vpack.c.bf16 %v1629_v47, %v1628_v9  ;;  %v1630_v17 = vpack.c.bf16 %v1623_v60, %v1622_v13 }
 0x90c   :  { %v1632_v10 = vpack.c.bf16 %v1627_v0, %v1626_v63  ;;  %v1631_v20 = vpack.c.bf16 %v1625_v25, %v1624_v11 }
 0x90d   :  { %2830 = vmatpush3.bf16.msra.mxu0 %v1633_v62 }
 0x90e   :  { %2831 = vmatprep.subr.bf16.mxu0 %v3125_v61 }
 0x911   :  { %2832 = vmatpush3.bf16.msra.mxu0 %v1632_v10 }
 0x912   :  { %2833 = vmatprep.subr.bf16.mxu0 %v3125_v61 }
 0x915   :  { %2834 = vmatpush3.bf16.msra.mxu0 %v1631_v20 }
 0x916   :  { %v1450_v23 = vpop.permute.xlu1 %1449  ;;  %2835 = vmatprep.subr.bf16.mxu0 %v3125_v61 }
 0x917   :  { %1453 = vst.msk [vmem:[#allocation2] sm:$0xff] %vm1452_vm5, %v1450_v23 }
 0x919   :  { %2836 = vmatpush3.bf16.msra.mxu0 %v1630_v17 }
 0x91a   :  { %2915 = vmatprep.subr.msk.bf16.mxu0 %vm359_vm1, %v3385_v42 }
 0x91c   :  { %2838 = vmatmul.mubr.msk.bf16.vlgmr.msra.gmra.mxu0 %vm428_vm4, %v3381_v59 }
 0x91d   :  { %2842 = vmatpush3.bf16.msra.mxu0 %v1718_v24  ;;  %2843 = vmatprep.mubr.msk.bf16.mxu0 %vm346_vm2, %v1695_v31 }
 0x91e   :  { %2873 = vmatprep.subr.bf16.mxu0 %v3125_v61 }
 0x924   :  { %2844 = vmatmul.mubr.msk.bf16.vlgmr.msra.gmra.mxu0 %vm346_vm2, %v1696_v33 }
 0x925   :  { %2847 = vmatprep.mubr.msk.bf16.mxu0 %vm346_vm2, %v1697_v46 }
 0x92c   :  { %2848 = vmatmul.mubr.msk.bf16.gmra.mxu0 %vm346_vm2, %v1698_v52 }
 0x92d   :  { %2881 = vmatprep.mubr.msk.bf16.mxu0 %vm3126_vm3, %v3125_v61 }
 0x9dc   :  { %v3572_v15 = vpop.f32.mrf.mxu0 }
 0x9de   :  { %v2839_v42 = vpop.f32.mrf.mxu0 }
 0x9e0   :  { %v1676_v16 = vpop.f32.mrf.mxu0 }
 0x9e2   :  { %v2840_v19 = vpop.f32.mrf.mxu0 }
 0x9e4   :  { %v2845_v59 = vpop.f32.mrf.mxu0 }
 0x9e5   :  { %v1787_v3 = vsel %vm428_vm4, %v2845_v59, -inf }
 0x9e6   :  { %v1754_v27 = vpop.f32.mrf.mxu0 }
 0x9e7   :  { %v1785_v58 = vsel %vm428_vm4, %v1754_v27, -inf }
 0x9e8   :  { %v2846_v18 = vpop.f32.mrf.mxu0 }
 0x9e9   :  { %v1788_v44 = vsel %vm428_vm4, %v2846_v18, -inf }
 0x9ea   :  { %v1757_v28 = vpop.f32.mrf.mxu0 }
 0x9eb   :  { %v1786_v22 = vsel %vm428_vm4, %v1757_v28, -inf }
 0x9ec   :  { %v2849_v43 = vpop.f32.mrf.mxu0 }
 0x9ed   :  { %v1793_v1 = vsel %vm428_vm4, %v2849_v43, -inf }
 0x9ee   :  { %v1770_v29 = vpop.f32.mrf.mxu0  ;;  %v1794_v7 = vmax.f32 %v1787_v3, %v1793_v1 }
 0x9ef   :  { %v1789_v34 = vsel %vm428_vm4, %v1770_v29, -inf }
 0x9f0   :  { %v2850_v53 = vpop.f32.mrf.mxu0  ;;  %v1790_v36 = vmax.f32 %v1785_v58, %v1789_v34 }
 0x9f1   :  { %v1795_v35 = vsel %vm428_vm4, %v2850_v53, -inf }
 0x9f2   :  { %v1796_v30 = vmax.f32 %v1788_v44, %v1795_v35  ;;  %v1773_v21 = vpop.f32.mrf.mxu0 }
 0x9f3   :  { %v1791_v5 = vsel %vm428_vm4, %v1773_v21, -inf }
 0x9f4   :  { %v1792_v2 = vmax.f32 %v1786_v22, %v1791_v5  ;;  %v1798_v14 = vmax.f32 %v1794_v7, %v1796_v30 }
 0x9f6   :  { %v1797_v31 = vmax.f32 %v1790_v36, %v1792_v2 }
 0x9f8   :  { %v1799_v32 = vmax.f32 %v1797_v31, %v1798_v14 }
 0x9fa   :  { %v1800_v12 = vrot.slane %v1799_v32, 4 }
 0x9fc   :  { %v1801_v4 = vmax.f32 %v1799_v32, %v1800_v12 }
 0x9fe   :  { %v1802_v45 = vrot.slane %v1801_v4, 2 }
 0xa00   :  { %v1803_v37 = vmax.f32 %v1801_v4, %v1802_v45 }
 0xa02   :  { %v1804_v6 = vrot.slane %v1803_v37, 1 }
 0xa04   :  { %v1805_v8 = vmax.f32 %v1803_v37, %v1804_v6 }
 0xa06   :  { %v1806_v38 = vsub.f32 %v1754_v27, %v1805_v8  ;;  %v1807_v33 = vsub.f32 %v1757_v28, %v1805_v8  ;;  %v1808_v39 = vsub.f32 %v2845_v59, %v1805_v8  ;;  %v1809_v40 = vsub.f32 %v2846_v18, %v1805_v8 }
 0xa07   :  { %v1810_v41 = vsub.f32 %v1770_v29, %v1805_v8  ;;  %v1811_v55 = vsub.f32 %v1773_v21, %v1805_v8  ;;  %v1812_v50 = vsub.f32 %v2849_v43, %v1805_v8  ;;  %v1813_v9 = vsub.f32 %v2850_v53, %v1805_v8  ;;  %v1865_v8 = vpop.permute.xlu0 %1864 }
 0xa08   :  { %v1814_v46 = vmul.f32 1.442695, %v1806_v38  ;;  %v1816_v48 = vmul.f32 1.442695, %v1807_v33  ;;  %v1818_v49 = vmul.f32 1.442695, %v1808_v39 }
 0xa09   :  { %v1820_v52 = vmul.f32 1.442695, %v1809_v40  ;;  %v1822_v57 = vmul.f32 1.442695, %v1810_v41  ;;  %v1824_v47 = vmul.f32 1.442695, %v1811_v55 }
 0xa0a   :  { %3068 = vpow2.f32 %v1814_v46  ;;  %v1826_v13 = vmul.f32 1.442695, %v1812_v50  ;;  %v1828_v60 = vmul.f32 1.442695, %v1813_v9 }
 0xa0b   :  { %3070 = vpow2.f32 %v1816_v48  ;;  %v1934_v33 = vpop.permute.xlu0 %1933 }
 0xa0c   :  { %3072 = vpow2.f32 %v1818_v49  ;;  %v1948_v39 = vsel %vm359_vm1, %v1934_v33, 0 }
 0xa0d   :  { %3074 = vpow2.f32 %v1820_v52 }
 0xa0e   :  { %3076 = vpow2.f32 %v1822_v57 }
 0xa0f   :  { %3078 = vpow2.f32 %v1824_v47 }
 0xa10   :  { %3080 = vpow2.f32 %v1826_v13 }
 0xa11   :  { %3082 = vpow2.f32 %v1828_v60 }
 0xa17   :  { %v3069_v62 = vpop.eup %3068 }
 0xa18   :  { %v3071_v63 = vpop.eup %3070  ;;  %v1830_v0 = vsel %vm428_vm4, %v3069_v62, 0.0 }
 0xa19   :  { %v3073_v17 = vpop.eup %3072  ;;  %v1831_v10 = vsel %vm428_vm4, %v3071_v63, 0.0 }
 0xa1a   :  { %v3075_v11 = vpop.eup %3074  ;;  %v1832_v25 = vadd.f32 %v1831_v10, %v1830_v0  ;;  %v1833_v20 = vsel %vm428_vm4, %v3073_v17, 0.0 }
 0xa1b   :  { %v3077_v23 = vpop.eup %3076  ;;  %v1835_v42 = vsel %vm428_vm4, %v3075_v11, 0.0 }
 0xa1c   :  { %v1834_v24 = vadd.f32 %v1833_v20, %v1832_v25  ;;  %v3079_v16 = vpop.eup %3078  ;;  %v1837_v59 = vsel %vm428_vm4, %v3077_v23, 0.0 }
 0xa1d   :  { %v3081_v27 = vpop.eup %3080  ;;  %v1839_v28 = vsel %vm428_vm4, %v3079_v16, 0.0 }
 0xa1e   :  { %v1836_v19 = vadd.f32 %v1835_v42, %v1834_v24  ;;  %v3083_v43 = vpop.eup %3082  ;;  %v1841_v53 = vsel %vm428_vm4, %v3081_v27, 0.0 }
 0xa1f   :  { %v1843_v1 = vsel %vm428_vm4, %v3083_v43, 0.0 }
 0xa20   :  { %v1838_v18 = vadd.f32 %v1837_v59, %v1836_v19 }
 0xa22   :  { %v1840_v29 = vadd.f32 %v1839_v28, %v1838_v18 }
 0xa24   :  { %v1842_v44 = vadd.f32 %v1841_v53, %v1840_v29 }
 0xa26   :  { %v1844_v34 = vadd.f32 %v1843_v1, %v1842_v44 }
 0xa28   :  { %v1845_v35 = vrot.slane %v1844_v34, 4 }
 0xa2a   :  { %v1846_v30 = vadd.f32 %v1845_v35, %v1844_v34 }
 0xa2c   :  { %v1847_v21 = vrot.slane %v1846_v30, 2 }
 0xa2e   :  { %v1848_v3 = vadd.f32 %v1847_v21, %v1846_v30 }
 0xa30   :  { %v1849_v58 = vrot.slane %v1848_v3, 1 }
 0xa32   :  { %v1850_v22 = vadd.f32 %v1849_v58, %v1848_v3 }
 0xa34   :  { %3084 = vrcp.f32 %v1850_v22 }
 0xa41   :  { %v3085_v5 = vpop.eup %3084 }
 0xa42   :  { %v1858_v7 = vmul.f32 %v3085_v5, %v3081_v27  ;;  %v1859_v36 = vmul.f32 %v3085_v5, %v3083_v43  ;;  %v1852_v2 = vmul.f32 %v3085_v5, %v3069_v62  ;;  %v1853_v14 = vmul.f32 %v3085_v5, %v3071_v63 }
 0xa43   :  { %v1856_v32 = vmul.f32 %v3085_v5, %v3077_v23  ;;  %v1857_v12 = vmul.f32 %v3085_v5, %v3079_v16  ;;  %v1854_v37 = vmul.f32 %v3085_v5, %v3073_v17  ;;  %v1855_v6 = vmul.f32 %v3085_v5, %v3075_v11 }
 0xa44   :  { %v1863_v31 = vpack.c.bf16 %v1859_v36, %v1858_v7  ;;  %v1860_v4 = vpack.c.bf16 %v1853_v14, %v1852_v2 }
 0xa45   :  { %v1862_v45 = vpack.c.bf16 %v1857_v12, %v1856_v32  ;;  %v1861_v38 = vpack.c.bf16 %v1855_v6, %v1854_v37 }
 0xa46   :  { %2852 = vmatpush3.bf16.msra.mxu1 %v1863_v31 }
 0xa47   :  { %2853 = vmatprep.subr.bf16.mxu1 %v3125_v61 }
 0xa4a   :  { %2854 = vmatpush3.bf16.msra.mxu1 %v1862_v45 }
 0xa4b   :  { %2855 = vmatprep.subr.bf16.mxu1 %v3125_v61 }
 0xa4e   :  { %2856 = vmatpush3.bf16.msra.mxu1 %v1861_v38 }
 0xa4f   :  { %2857 = vmatprep.subr.bf16.mxu1 %v3125_v61 }
 0xa52   :  { %2858 = vmatpush3.bf16.msra.mxu1 %v1860_v4 }
 0xa53   :  { %2916 = vmatprep.subr.msk.bf16.mxu1 %vm359_vm1, %v1934_v33 }
 0xa55   :  { %2860 = vmatmul.mubr.msk.bf16.vlgmr.msra.gmra.mxu1 %vm428_vm4, %v1865_v8 }
 0xa56   :  { %2864 = vmatpush3.bf16.msra.mxu1 %v1948_v39  ;;  %2865 = vmatprep.mubr.msk.bf16.mxu1 %vm346_vm2, %v3547_v51 }
 0xa5d   :  { %2866 = vmatmul.mubr.msk.bf16.vlgmr.msra.gmra.mxu1 %vm346_vm2, %v3549_v56 }
 0xa5e   :  { %2869 = vmatprep.mubr.msk.bf16.mxu1 %vm346_vm2, %v3551_v54 }
 0xa65   :  { %2870 = vmatmul.mubr.msk.bf16.gmra.mxu1 %vm346_vm2, %v3554_v26 }
 0xb15   :  { %v1903_v40 = vpop.f32.mrf.mxu1 }
 0xb16   :  { %1910 = vrot.lane.b32.xlu0 %v1903_v40, %s3124_s2 }
 0xb17   :  { %v2861_v41 = vpop.f32.mrf.mxu1 }
 0xb19   :  { %v1906_v46 = vpop.f32.mrf.mxu1 }
 0xb1b   :  { %v2862_v48 = vpop.f32.mrf.mxu1 }
 0xb1d   :  { %v2867_v49 = vpop.f32.mrf.mxu1 }
 0xb1e   :  { %v2017_v62 = vsel %vm428_vm4, %v2867_v49, -inf }
 0xb1f   :  { %v1984_v55 = vpop.f32.mrf.mxu1 }
 0xb20   :  { %v2015_v63 = vsel %vm428_vm4, %v1984_v55, -inf }
 0xb21   :  { %v2868_v52 = vpop.f32.mrf.mxu1 }
 0xb22   :  { %v2018_v56 = vsel %vm428_vm4, %v2868_v52, -inf }
 0xb23   :  { %v1987_v50 = vpop.f32.mrf.mxu1 }
 0xb24   :  { %v2016_v0 = vsel %vm428_vm4, %v1987_v50, -inf }
 0xb25   :  { %v2871_v51 = vpop.f32.mrf.mxu1 }
 0xb26   :  { %v2023_v54 = vsel %vm428_vm4, %v2871_v51, -inf }
 0xb27   :  { %v2000_v57 = vpop.f32.mrf.mxu1  ;;  %v2024_v10 = vmax.f32 %v2017_v62, %v2023_v54 }
 0xb28   :  { %v2019_v47 = vsel %vm428_vm4, %v2000_v57, -inf }
 0xb29   :  { %v2872_v9 = vpop.f32.mrf.mxu1  ;;  %v2020_v11 = vmax.f32 %v2015_v63, %v2019_v47 }
 0xb2a   :  { %v2025_v26 = vsel %vm428_vm4, %v2872_v9, -inf }
 0xb2b   :  { %v2026_v13 = vmax.f32 %v2018_v56, %v2025_v26  ;;  %v2003_v60 = vpop.f32.mrf.mxu1 }
 0xb2c   :  { %v2021_v17 = vsel %vm428_vm4, %v2003_v60, -inf }
 0xb2d   :  { %v2022_v25 = vmax.f32 %v2016_v0, %v2021_v17  ;;  %v2028_v20 = vmax.f32 %v2024_v10, %v2026_v13 }
 0xb2f   :  { %v2027_v23 = vmax.f32 %v2020_v11, %v2022_v25 }
 0xb31   :  { %v2029_v24 = vmax.f32 %v2027_v23, %v2028_v20 }
 0xb33   :  { %v2030_v42 = vrot.slane %v2029_v24, 4 }
 0xb35   :  { %v2031_v16 = vmax.f32 %v2029_v24, %v2030_v42 }
 0xb37   :  { %v2032_v19 = vrot.slane %v2031_v16, 2 }
 0xb39   :  { %v2033_v59 = vmax.f32 %v2031_v16, %v2032_v19  ;;  %v2095_v16 = vpop.permute.xlu0 %2094 }
 0xb3b   :  { %v2034_v27 = vrot.slane %v2033_v59, 1 }
 0xb3d   :  { %v2035_v18 = vmax.f32 %v2033_v59, %v2034_v27 }
 0xb3f   :  { %v2036_v28 = vsub.f32 %v1984_v55, %v2035_v18  ;;  %v2037_v43 = vsub.f32 %v1987_v50, %v2035_v18  ;;  %v2038_v29 = vsub.f32 %v2867_v49, %v2035_v18  ;;  %v2039_v53 = vsub.f32 %v2868_v52, %v2035_v18 }
 0xb40   :  { %v2040_v44 = vsub.f32 %v2000_v57, %v2035_v18  ;;  %v2041_v30 = vsub.f32 %v2003_v60, %v2035_v18  ;;  %v2042_v3 = vsub.f32 %v2871_v51, %v2035_v18  ;;  %v2043_v22 = vsub.f32 %v2872_v9, %v2035_v18 }
 0xb41   :  { %v2044_v1 = vmul.f32 1.442695, %v2036_v28  ;;  %v2046_v34 = vmul.f32 1.442695, %v2037_v43  ;;  %v2048_v35 = vmul.f32 1.442695, %v2038_v29 }
 0xb42   :  { %v2050_v21 = vmul.f32 1.442695, %v2039_v53  ;;  %v2052_v58 = vmul.f32 1.442695, %v2040_v44  ;;  %v2054_v5 = vmul.f32 1.442695, %v2041_v30 }
 0xb43   :  { %3086 = vpow2.f32 %v2044_v1  ;;  %v2056_v7 = vmul.f32 1.442695, %v2042_v3  ;;  %v2058_v36 = vmul.f32 1.442695, %v2043_v22  ;;  %v2952_v43 = vld [vmem:[%s3743_s3] sm:$0xff]   ;;  %v3636_v53 = vld [vmem:[%s3739_s4 + $0x10] sm:$0xff] }
 0xb44   :  { %3088 = vpow2.f32 %v2046_v34  ;;  %v3642_v44 = vld [vmem:[%s3739_s4] sm:$0xff]  ;;  %v3648_v1 = vld [vmem:[%s3739_s4 + $0x8] sm:$0xff]  ;;  %v3655_v34 = vld [vmem:[%s3739_s4 + $0x18] sm:$0xff] }
 0xb45   :  { %3090 = vpow2.f32 %v2048_v35  ;;  %v3129_v35 = vmov 4  }
 0xb46   :  { %3092 = vpow2.f32 %v2050_v21 }
 0xb47   :  { %3094 = vpow2.f32 %v2052_v58 }
 0xb48   :  { %3096 = vpow2.f32 %v2054_v5  ;;  %v2148_v5 = vld [vmem:[#allocation2] sm:$0xff] }
 0xb49   :  { %3098 = vpow2.f32 %v2056_v7 }
 0xb4a   :  { %3100 = vpow2.f32 %v2058_v36 }
 0xb50   :  { %v3087_v2 = vpop.eup %3086 }
 0xb51   :  { %v3089_v14 = vpop.eup %3088  ;;  %v2060_v31 = vsel %vm428_vm4, %v3087_v2, 0.0 }
 0xb52   :  { %v3091_v32 = vpop.eup %3090  ;;  %v2061_v12 = vsel %vm428_vm4, %v3089_v14, 0.0 }
 0xb53   :  { %v3093_v4 = vpop.eup %3092  ;;  %v2062_v45 = vadd.f32 %v2061_v12, %v2060_v31  ;;  %v2063_v37 = vsel %vm428_vm4, %v3091_v32, 0.0  ;;  %v3130_v31 = vmov 5  }
 0xb54   :  { %v3095_v6 = vpop.eup %3094  ;;  %v2065_v38 = vsel %vm428_vm4, %v3093_v4, 0.0 }
 0xb55   :  { %v2064_v8 = vadd.f32 %v2063_v37, %v2062_v45  ;;  %v3097_v33 = vpop.eup %3096  ;;  %v2067_v40 = vsel %vm428_vm4, %v3095_v6, 0.0 }
 0xb56   :  { %v3099_v41 = vpop.eup %3098  ;;  %v2069_v48 = vsel %vm428_vm4, %v3097_v33, 0.0 }
 0xb57   :  { %v2066_v39 = vadd.f32 %v2065_v38, %v2064_v8  ;;  %v3101_v49 = vpop.eup %3100  ;;  %v2071_v52 = vsel %vm428_vm4, %v3099_v41, 0.0 }
 0xb58   :  { %v2073_v51 = vsel %vm428_vm4, %v3101_v49, 0.0 }
 0xb59   :  { %v2068_v46 = vadd.f32 %v2067_v40, %v2066_v39 }
 0xb5b   :  { %v2070_v55 = vadd.f32 %v2069_v48, %v2068_v46 }
 0xb5d   :  { %v2072_v50 = vadd.f32 %v2071_v52, %v2070_v55  ;;  %v3120_v52 = vld [vmem:[%s3740_s0 + $0x10] sm:$0xff] }
 0xb5f   :  { %v2074_v57 = vadd.f32 %v2073_v51, %v2072_v50 }
 0xb61   :  { %v2075_v9 = vrot.slane %v2074_v57, 4 }
 0xb63   :  { %v2076_v56 = vadd.f32 %v2075_v9, %v2074_v57  ;;  %v3121_v57 = vld [vmem:[%s3740_s0 + $0x18] sm:$0xff] }
 0xb65   :  { %v2077_v54 = vrot.slane %v2076_v56, 2 }
 0xb67   :  { %v2078_v47 = vadd.f32 %v2077_v54, %v2076_v56 }
 0xb69   :  { %v2079_v26 = vrot.slane %v2078_v47, 1 }
 0xb6b   :  { %v2080_v13 = vadd.f32 %v2079_v26, %v2078_v47 }
 0xb6d   :  { %3102 = vrcp.f32 %v2080_v13 }
 0xb7a   :  { %v3103_v60 = vpop.eup %3102 }
 0xb7b   :  { %v2088_v62 = vmul.f32 %v3103_v60, %v3099_v41  ;;  %v2089_v63 = vmul.f32 %v3103_v60, %v3101_v49  ;;  %v2082_v0 = vmul.f32 %v3103_v60, %v3087_v2  ;;  %v2083_v17 = vmul.f32 %v3103_v60, %v3089_v14  ;;  %v2953_v2 = vld [vmem:[%s3743_s3 + $0x8] sm:$0xff]   ;;  %v2954_v14 = vld [vmem:[%s3743_s3 + $0x10] sm:$0xff]   ;;  %v3118_v41 = vld [vmem:[%s3740_s0] sm:$0xff] }
 0xb7c   :  { %v2086_v11 = vmul.f32 %v3103_v60, %v3095_v6  ;;  %v2087_v25 = vmul.f32 %v3103_v60, %v3097_v33  ;;  %v2084_v24 = vmul.f32 %v3103_v60, %v3091_v32  ;;  %v2085_v42 = vmul.f32 %v3103_v60, %v3093_v4  ;;  %2897 = vmatprep.mubr.msk.bf16.mxu1 %vm224_vm0, %v2954_v14  ;;  %v3119_v49 = vld [vmem:[%s3740_s0 + $0x8] sm:$0xff] }
 0xb7d   :  { %v2093_v10 = vpack.c.bf16 %v2089_v63, %v2088_v62  ;;  %v2090_v20 = vpack.c.bf16 %v2083_v17, %v2082_v0 }
 0xb7e   :  { %v2092_v23 = vpack.c.bf16 %v2087_v25, %v2086_v11  ;;  %v2091_v19 = vpack.c.bf16 %v2085_v42, %v2084_v24 }
 0xb7f   :  { %2874 = vmatpush3.bf16.msra.mxu0 %v2093_v10 }
 0xb80   :  { %2875 = vmatprep.subr.bf16.mxu0 %v3125_v61 }
 0xb83   :  { %2876 = vmatpush3.bf16.msra.mxu0 %v2092_v23 }
 0xb84   :  { %2877 = vmatprep.subr.bf16.mxu0 %v3125_v61 }
 0xb87   :  { %2878 = vmatpush3.bf16.msra.mxu0 %v2091_v19 }
 0xb88   :  { %v1911_v59 = vpop.permute.xlu0 %1910  ;;  %2879 = vmatprep.subr.bf16.mxu0 %v3125_v61  ;;  %v3127_v61 = vmov 2  }
 0xb89   :  { %1913 = vst.msk [vmem:[#allocation2 + $0x10] sm:$0xff] %vm1452_vm5, %v1911_v59  ;;  %2934 = vset.pattern.permute.xlu0 %v3127_v61  ;;  %2935 = vset.pattern.permute.xlu1 %v3127_v61 }
 0xb8a   :  { %2163 = vperm.xlu1 %2935, %v3636_v53  }
 0xb8b   :  { %2880 = vmatpush3.bf16.msra.mxu0 %v2090_v20 }
 0xb8e   :  { %2882 = vmatmul.mubr.msk.bf16.vlgmr.msra.gmra.mxu0 %vm428_vm4, %v2095_v16 }
 0xb8f   :  { %2889 = vmatprep.mubr.msk.bf16.mxu0 %vm224_vm0, %v2952_v43 }
 0xb90   :  { %v2150_v3 = vld [vmem:[#allocation2 + $0x10] sm:$0xff] }
 0xc05   :  { %v2164_v37 = vpop.permute.xlu1 %2163 }
 0xc4e   :  { %v2133_v27 = vpop.f32.mrf.mxu0 }
 0xc4f   :  { %2140 = vrot.lane.b32.xlu0 %v2133_v27, %s3124_s2 }
 0xc50   :  { %v2883_v18 = vpop.f32.mrf.mxu0 }
 0xc52   :  { %v2136_v28 = vpop.f32.mrf.mxu0 }
 0xc53   :  { %1680 = vrot.lane.b32.xlu0 %v3572_v15, %s3124_s2  ;;  %v3128_v15 = vmov 3  }
 0xc54   :  { %v2884_v29 = vpop.f32.mrf.mxu0  ;;  %2936 = vset.pattern.permute.xlu1 %v3128_v15 }
 0xc55   :  { %2282 = vperm.xlu1 %2936, %v3636_v53  }
 0xc57   :  { %2155 = vperm.xlu0 %2934, %v3642_v44  }
 0xc59   :  { %2938 = vset.pattern.permute.xlu1 %v3129_v35 }
 0xc5a   :  { %2302 = vperm.xlu1 %2938, %v3636_v53  }
 0xc5b   :  { %2159 = vperm.xlu0 %2934, %v3648_v1  }
 0xc5e   :  { %2306 = vperm.xlu1 %2938, %v3655_v34  }
 0xc5f   :  { %2167 = vperm.xlu0 %2934, %v3655_v34  }
 0xc62   :  { %2939 = vset.pattern.permute.xlu1 %v3128_v15 }
 0xc63   :  { %2937 = vset.pattern.permute.xlu0 %v3128_v15  ;;  %2278 = vperm.xlu1 %2939, %v3648_v1  }
 0xc64   :  { %2286 = vperm.xlu0 %2937, %v3655_v34  }
 0xc67   :  { %2941 = vset.pattern.permute.xlu1 %v3129_v35 }
 0xc68   :  { %2274 = vperm.xlu0 %2937, %v3642_v44   ;;  %2298 = vperm.xlu1 %2941, %v3648_v1  }
 0xc6c   :  { %2940 = vset.pattern.permute.xlu0 %v3129_v35  ;;  %2942 = vset.pattern.permute.xlu1 %v3130_v31 }
 0xc6d   :  { %2294 = vperm.xlu0 %2940, %v3642_v44   ;;  %2329 = vperm.xlu1 %2942, %v3636_v53  }
 0xc71   :  { %2943 = vset.pattern.permute.xlu0 %v3130_v31  ;;  %2321 = vperm.xlu1 %2942, %v3642_v44  }
 0xc72   :  { %2333 = vperm.xlu0 %2943, %v3655_v34  }
 0xc75   :  { %2325 = vperm.xlu1 %2942, %v3648_v1  }
 0xcc1   :  { %v2141_v30 = vpop.permute.xlu0 %2140 }
 0xcc2   :  { %2143 = vst.msk [vmem:[#allocation2 + $0x18] sm:$0xff] %vm1452_vm5, %v2141_v30 }
 0xcc5   :  { %v1681_v21 = vpop.permute.xlu0 %1680 }
 0xcc6   :  { %1683 = vst.msk [vmem:[#allocation2 + $0x8] sm:$0xff] %vm1452_vm5, %v1681_v21 }
 0xcc9   :  { %v2151_v58 = vld [vmem:[#allocation2 + $0x18] sm:$0xff] }
 0xcca   :  { %v2153_v22 = vpack.c.bf16 %v2151_v58, %v2150_v3 }
 0xccc   :  { %2885 = vmatprep.subr.bf16.mxu0 %v2153_v22 }
 0xccd   :  { %2886 = vmatpush3.bf16.msra.mxu0 %v2153_v22  ;;  %v2149_v7 = vld [vmem:[#allocation2 + $0x8] sm:$0xff] }
 0xcce   :  { %v2152_v36 = vpack.c.bf16 %v2149_v7, %v2148_v5 }
 0xcd0   :  { %2887 = vmatprep.subr.bf16.mxu0 %v2152_v36  ;;  %v2283_v61 = vpop.permute.xlu1 %2282 }
 0xcd1   :  { %2888 = vmatpush3.bf16.msra.mxu0 %v2152_v36 }
 0xcd2   :  { %v2156_v32 = vpop.permute.xlu0 %2155 }
 0xcd4   :  { %2890 = vmatmul.mubr.msk.bf16.vlgmr.msra.gmra.mxu0 %vm224_vm0, %v2953_v2 }
 0xcd5   :  { %v2303_v21 = vpop.permute.xlu1 %2302 }
 0xcd6   :  { %v2160_v4 = vpop.permute.xlu0 %2159 }
 0xcd9   :  { %v2307_v58 = vpop.permute.xlu1 %2306 }
 0xcda   :  { %v2168_v40 = vpop.permute.xlu0 %2167 }
 0xcde   :  { %v2279_v22 = vpop.permute.xlu1 %2278 }
 0xcdf   :  { %v2287_v3 = vpop.permute.xlu0 %2286 }
 0xce3   :  { %v2275_v5 = vpop.permute.xlu0 %2274 }
 0xd94   :  { %v2891_v12 = vpop.f32.mrf.mxu0 }
 0xd95   :  { %v2229_v33 = vadd.f32 %v2891_v12, %v2164_v37  ;;  %v2295_v12 = vpop.permute.xlu0 %2294 }
 0xd96   :  { %v2220_v45 = vpop.f32.mrf.mxu0 }
 0xd97   :  { %v2221_v8 = vadd.f32 %v2220_v45, %v2156_v32  ;;  %v3692_v50 = vadd.f32 %v3120_v52, %v2229_v33  ;;  %v2299_v32 = vpop.permute.xlu1 %2298  ;;  %v3131_v52 = vmov 6  }
 0xd98   :  { %v2892_v6 = vpop.f32.mrf.mxu0  ;;  %2945 = vset.pattern.permute.xlu1 %v3131_v52  ;;  %2944 = vset.pattern.permute.xlu0 %v3131_v52 }
 0xd99   :  { %v3682_v46 = vadd.f32 %v3118_v41, %v2221_v8  ;;  %v2232_v48 = vadd.f32 %v2892_v6, %v2168_v40  ;;  %2433 = vperm.xlu1 %2945, %v3648_v1   ;;  %2429 = vperm.xlu0 %2944, %v3642_v44  }
 0xd9a   :  { %v2223_v38 = vpop.f32.mrf.mxu0 }
 0xd9b   :  { %v2224_v39 = vadd.f32 %v2223_v38, %v2160_v4  ;;  %v3699_v9 = vadd.f32 %v3121_v57, %v2232_v48  ;;  %v2955_v48 = vld [vmem:[%s3743_s3 + $0x18] sm:$0xff]  }
 0xd9d   :  { %v3687_v55 = vadd.f32 %v3119_v49, %v2224_v39  ;;  %v2956_v49 = vld [vmem:[%s3743_s3 + $0x20] sm:$0xff]   ;;  %2437 = vperm.xlu1 %2945, %v3636_v53   ;;  %2441 = vperm.xlu0 %2944, %v3655_v34  }
 0xd9e   :  { %2905 = vmatprep.mubr.msk.bf16.mxu0 %vm224_vm0, %v2956_v49 }
 0xd9f   :  { %v2239_v51 = vadd.f32 %v3687_v55, %v3682_v46 }
 0xda1   :  { %v2240_v56 = vadd.f32 %v2239_v51, %v3692_v50  ;;  %v2330_v51 = vpop.permute.xlu1 %2329 }
 0xda3   :  { %v2241_v54 = vadd.f32 %v2240_v56, %v3699_v9 }
 0xda5   :  { %v2242_v47 = vrot.slane %v2241_v54, 4  ;;  %v2322_v56 = vpop.permute.xlu1 %2321 }
 0xda7   :  { %v2243_v26 = vadd.f32 %v2242_v47, %v2241_v54 }
 0xda9   :  { %v2244_v13 = vrot.slane %v2243_v26, 2 }
 0xdab   :  { %v2245_v60 = vadd.f32 %v2244_v13, %v2243_v26  ;;  %v2334_v26 = vpop.permute.xlu0 %2333 }
 0xdad   :  { %v2246_v62 = vrot.slane %v2245_v60, 1 }
 0xdaf   :  { %v2247_v63 = vadd.f32 %v2246_v62, %v2245_v60 }
 0xdb1   :  { %v2248_v0 = vmul.f32 0.03125, %v2247_v63 }
 0xdb3   :  { %v2250_v17 = vsub.f32 %v3687_v55, %v2248_v0  ;;  %v2249_v10 = vsub.f32 %v3682_v46, %v2248_v0  ;;  %v2251_v11 = vsub.f32 %v3692_v50, %v2248_v0  ;;  %v2252_v20 = vsub.f32 %v3699_v9, %v2248_v0 }
 0xdb5   :  { %v2254_v25 = vmul.f32 %v2250_v17, %v2250_v17  ;;  %v2253_v23 = vmul.f32 %v2249_v10, %v2249_v10  ;;  %v2255_v24 = vmul.f32 %v2251_v11, %v2251_v11  ;;  %v2256_v16 = vmul.f32 %v2252_v20, %v2252_v20 }
 0xdb7   :  { %v2257_v42 = vadd.f32 %v2254_v25, %v2253_v23 }
 0xdb9   :  { %v2258_v19 = vadd.f32 %v2257_v42, %v2255_v24 }
 0xdbb   :  { %v2259_v59 = vadd.f32 %v2258_v19, %v2256_v16 }
 0xdbd   :  { %v2260_v27 = vrot.slane %v2259_v59, 4 }
 0xdbf   :  { %v2261_v18 = vadd.f32 %v2260_v27, %v2259_v59 }
 0xdc1   :  { %v2262_v28 = vrot.slane %v2261_v18, 2 }
 0xdc3   :  { %v2263_v43 = vadd.f32 %v2262_v28, %v2261_v18 }
 0xdc5   :  { %v2264_v29 = vrot.slane %v2263_v43, 1 }
 0xdc7   :  { %v2265_v15 = vadd.f32 %v2264_v29, %v2263_v43 }
 0xdc9   :  { %v2266_v35 = vmul.f32 0.03125, %v2265_v15 }
 0xdcb   :  { %v2267_v30 = vadd.f32 1e-05, %v2266_v35 }
 0xdcd   :  { %3104 = vrsqrt.f32 %v2267_v30  ;;  %v2957_v30 = vld [vmem:[%s3743_s3 + $0x28] sm:$0xff]  }
 0xdda   :  { %v3105_v7 = vpop.eup %3104 }
 0xddb   :  { %v2271_v36 = vmul.f32 %v3105_v7, %v2251_v11  ;;  %v2272_v2 = vmul.f32 %v3105_v7, %v2252_v20  ;;  %v2270_v14 = vmul.f32 %v3105_v7, %v2250_v17  ;;  %v2269_v31 = vmul.f32 %v3105_v7, %v2249_v10  ;;  %v2326_v17 = vpop.permute.xlu1 %2325 }
 0xddd   :  { %v2291_v4 = vmul.f32 %v2283_v61, %v2271_v36  ;;  %v2292_v45 = vmul.f32 %v2287_v3, %v2272_v2  ;;  %v2290_v37 = vmul.f32 %v2279_v22, %v2270_v14  ;;  %v2289_v6 = vmul.f32 %v2275_v5, %v2269_v31 }
 0xddf   :  { %v2311_v8 = vadd.f32 %v2303_v21, %v2291_v4  ;;  %v2312_v38 = vadd.f32 %v2307_v58, %v2292_v45  ;;  %v2310_v33 = vadd.f32 %v2299_v32, %v2290_v37  ;;  %v2309_v39 = vadd.f32 %v2295_v12, %v2289_v6 }
 0xde1   :  { %v2319_v40 = vpack.c.bf16 %v2312_v38, %v2311_v8  ;;  %v2318_v41 = vpack.c.bf16 %v2310_v33, %v2309_v39 }
 0xde3   :  { %2893 = vmatprep.subr.bf16.mxu1 %v2319_v40 }
 0xde4   :  { %2894 = vmatpush3.bf16.msra.mxu1 %v2319_v40 }
 0xde5   :  { %2895 = vmatprep.subr.bf16.mxu1 %v2318_v41 }
 0xde8   :  { %2896 = vmatpush3.bf16.msra.mxu1 %v2318_v41 }
 0xdeb   :  { %2898 = vmatmul.mubr.msk.bf16.vlgmr.msra.gmra.mxu1 %vm224_vm0, %v2955_v48 }
 0xe14   :  { %v2434_v21 = vpop.permute.xlu1 %2433  ;;  %v2430_v58 = vpop.permute.xlu0 %2429 }
 0xe18   :  { %v2438_v3 = vpop.permute.xlu1 %2437  ;;  %v2442_v14 = vpop.permute.xlu0 %2441 }
 0xeab   :  { %v2899_v57 = vpop.f32.mrf.mxu1 }
 0xeac   :  { %v2395_v54 = vadd.f32 %v2899_v57, %v2330_v51 }
 0xead   :  { %v2386_v47 = vpop.f32.mrf.mxu1 }
 0xeae   :  { %v2407_v13 = vmul.f32 0.70710677, %v2395_v54  ;;  %v2387_v60 = vadd.f32 %v2386_v47, %v2322_v56  ;;  %v2403_v23 = vmul.f32 0.5, %v2395_v54 }
 0xeaf   :  { %v2900_v62 = vpop.f32.mrf.mxu1 }
 0xeb0   :  { %3106 = verf.f32 %v2407_v13  ;;  %v2405_v63 = vmul.f32 0.70710677, %v2387_v60  ;;  %v2398_v0 = vadd.f32 %v2900_v62, %v2334_v26  ;;  %v2401_v59 = vmul.f32 0.5, %v2387_v60 }
 0xeb1   :  { %v2389_v1 = vpop.f32.mrf.mxu1 }
 0xeb2   :  { %3108 = verf.f32 %v2405_v63  ;;  %v2408_v44 = vmul.f32 0.70710677, %v2398_v0  ;;  %v2390_v10 = vadd.f32 %v2389_v1, %v2326_v17  ;;  %v2404_v42 = vmul.f32 0.5, %v2398_v0 }
 0xeb4   :  { %3110 = verf.f32 %v2408_v44  ;;  %v2406_v53 = vmul.f32 0.70710677, %v2390_v10  ;;  %v2402_v28 = vmul.f32 0.5, %v2390_v10 }
 0xeb6   :  { %3112 = verf.f32 %v2406_v53 }
 0xebd   :  { %v3107_v34 = vpop.eup %3106 }
 0xebe   :  { %v2415_v25 = vadd.f32 1.0, %v3107_v34 }
 0xebf   :  { %v3109_v11 = vpop.eup %3108 }
 0xec0   :  { %v2413_v24 = vadd.f32 1.0, %v3109_v11  ;;  %v2419_v27 = vmul.f32 %v2415_v25, %v2403_v23 }
 0xec1   :  { %v3111_v20 = vpop.eup %3110 }
 0xec2   :  { %v2416_v16 = vadd.f32 1.0, %v3111_v20  ;;  %v2417_v29 = vmul.f32 %v2413_v24, %v2401_v59 }
 0xec3   :  { %v3113_v19 = vpop.eup %3112 }
 0xec4   :  { %v2420_v18 = vmul.f32 %v2416_v16, %v2404_v42  ;;  %v2414_v43 = vadd.f32 1.0, %v3113_v19 }
 0xec6   :  { %v2418_v61 = vmul.f32 %v2414_v43, %v2402_v28  ;;  %v2427_v15 = vpack.c.bf16 %v2420_v18, %v2419_v27 }
 0xec8   :  { %2901 = vmatprep.subr.bf16.mxu0 %v2427_v15  ;;  %v2426_v35 = vpack.c.bf16 %v2418_v61, %v2417_v29 }
 0xec9   :  { %2902 = vmatpush3.bf16.msra.mxu0 %v2427_v15 }
 0xeca   :  { %2903 = vmatprep.subr.bf16.mxu0 %v2426_v35 }
 0xecd   :  { %2904 = vmatpush3.bf16.msra.mxu0 %v2426_v35 }
 0xed0   :  { %2906 = vmatmul.mubr.msk.bf16.vlgmr.msra.gmra.mxu0 %vm224_vm0, %v2957_v30 }
 0xf90   :  { %v2907_v22 = vpop.f32.mrf.mxu0 }
 0xf91   :  { %v2503_v5 = vadd.f32 %v2907_v22, %v2438_v3 }
 0xf92   :  { %v2494_v7 = vpop.f32.mrf.mxu0 }
 0xf93   :  { %v2511_v36 = vadd.f32 %v2503_v5, %v3692_v50  ;;  %v2495_v2 = vadd.f32 %v2494_v7, %v2430_v58 }
 0xf94   :  { %v2908_v31 = vpop.f32.mrf.mxu0 }
 0xf95   :  { %2515 = vst [vmem:[%s3744_s5 + $0x10] sm:$0xff] %v2511_v36  ;;  %v2509_v32 = vadd.f32 %v2495_v2, %v3682_v46  ;;  %v2506_v12 = vadd.f32 %v2908_v31, %v2442_v14 }
 0xf96   :  { %v2497_v4 = vpop.f32.mrf.mxu0 }
 0xf97   :  { %2513 = vst [vmem:[%s3744_s5] sm:$0xff] %v2509_v32  ;;  %v2512_v45 = vadd.f32 %v2506_v12, %v3699_v9  ;;  %v2498_v37 = vadd.f32 %v2497_v4, %v2434_v21 }
 0xf99   :  { %2516 = vst [vmem:[%s3744_s5 + $0x18] sm:$0xff] %v2512_v45  ;;  %v2510_v50 = vadd.f32 %v2498_v37, %v3687_v55 }
 0xf9b   :  { %2514 = vst [vmem:[%s3744_s5 + $0x8] sm:$0xff] %v2510_v50 }

</bundles_post_ra>
